<compile_context>
chip_gen: v5e
topology: v5e:2x2
jax: 0.10.0
libtpu: 0.0.40
codegen_flags: <defaults>
</compile_context>

<pallas_src>
import functools

import numpy as np
import jax
import jax.numpy as jnp
from jax.experimental import pallas as pl
from jax.experimental.pallas import tpu as pltpu

SQRT2 = float(np.sqrt(2.0))
LANE = 128

# Dummy parameter from the torch module (__init__: nn.Parameter(torch.zeros(1))).
# Unused by forward(); kept for fidelity. loss() = dummy_weight * 0.1 is not a kernel.
DUMMY_WEIGHT = jnp.zeros((1,), dtype=jnp.float32)


def _crecip(ar, ai):
    """Complex reciprocal: EUP approx reciprocal + one Newton-Raphson refinement."""
    d = ar * ar + ai * ai
    inv = pl.reciprocal(d, approx=True)
    inv = inv * (2.0 - d * inv)          # Newton step -> ~f32 accuracy
    return ar * inv, -ai * inv


def _cmul(ar, ai, br, bi):
    return ar * br - ai * bi, ar * bi + ai * br


def _mvdr_kernel(y_ref, v_ref, out_ref, *, C, T, ref_mic_idx):
    # y_ref, v_ref: (1, 2, C, T, Fb); out_ref: (1, 2, 1, T, Fb). F (lanes) dense.
    inv_T = 1.0 / T
    load = 0.001 / SQRT2                 # torch: phi_v += (0.001/sqrt(2)) * (1+1j) * I

    # --- spatial covariance (time mean over sublanes axis); Hermitian upper triangle;
    #     channel slices read at point of use, nothing stays live past this phase.
    #     (jnp.sum(axis=-2) keeps the 8->1 reduce on the XLU, off the VALU slot.) ---
    def cov(ref, diag_load):
        phi = [[None] * C for _ in range(C)]
        for c in range(C):
            ar = ref[0, 0, c, :, :]      # (T, Fb)
            ai = ref[0, 1, c, :, :]
            rr = jnp.sum(ar * ar + ai * ai, axis=-2, keepdims=True) * inv_T + diag_load
            phi[c][c] = (rr, jnp.full_like(rr, diag_load))
            for d in range(c + 1, C):
                br = ref[0, 0, d, :, :]
                bi = ref[0, 1, d, :, :]
                re = jnp.sum(ar * br + ai * bi, axis=-2, keepdims=True) * inv_T
                im = jnp.sum(ai * br - ar * bi, axis=-2, keepdims=True) * inv_T
                phi[c][d] = (re, im)
                phi[d][c] = (re, -im)    # conjugate
        return phi

    phi_y = cov(y_ref, 0.0)
    phi_v = cov(v_ref, load)

    # --- sublane-pack the per-frequency system: row i of [phi_v | phi_y] becomes a
    #     (2C, Fb) real + (2C, Fb) imag slab (2C = 8 = full sublane tile for C=4). ---
    aug_r, aug_i = [], []
    for i in range(C):
        aug_r.append(jnp.concatenate(
            [phi_v[i][j][0] for j in range(C)] + [phi_y[i][j][0] for j in range(C)], axis=0))
        aug_i.append(jnp.concatenate(
            [phi_v[i][j][1] for j in range(C)] + [phi_y[i][j][1] for j in range(C)], axis=0))

    # --- Gauss-Jordan on the augmented system; right half becomes G = phi_v^{-1} phi_y.
    #     Full-width vreg row ops; pivot / factor broadcast from one sublane (hoisted).
    # TODO(synk): no pivoting; relies on the diagonal loading for conditioning
    # (torch's complex_inverse uses a pivoted LU).
    full = aug_r[0].shape                # (2C, Fb)
    for k in range(C):
        pr = aug_r[k][k:k + 1, :]
        pi = aug_i[k][k:k + 1, :]
        rr, ri = _crecip(pr, pi)
        rr = jnp.broadcast_to(rr, full)
        ri = jnp.broadcast_to(ri, full)
        rowk_r = rr * aug_r[k] - ri * aug_i[k]
        rowk_i = rr * aug_i[k] + ri * aug_r[k]
        aug_r[k], aug_i[k] = rowk_r, rowk_i
        for i in range(C):
            if i == k:
                continue
            fr = jnp.broadcast_to(aug_r[i][k:k + 1, :], full)
            fi = jnp.broadcast_to(aug_i[i][k:k + 1, :], full)
            aug_r[i] = aug_r[i] - (fr * rowk_r - fi * rowk_i)
            aug_i[i] = aug_i[i] - (fr * rowk_i + fi * rowk_r)

    # --- l = trace(G) - (C/sqrt(2))*(1+1j);  inv_l = 1/l. ---
    l_r = aug_r[0][C:C + 1, :]
    l_i = aug_i[0][C:C + 1, :]
    for i in range(1, C):
        l_r = l_r + aug_r[i][C + i:C + i + 1, :]
        l_i = l_i + aug_i[i][C + i:C + i + 1, :]
    shift = C / SQRT2
    invl_r, invl_i = _crecip(l_r - shift, l_i - shift)

    # --- H = inv_l * (G - (1+1j)/sqrt(2) I) e_ref ;  X = H^H y, summed over channels.
    #     y is re-read from VMEM at point of use. ---
    inv_s2 = 1.0 / SQRT2
    ref_col = C + ref_mic_idx
    Xr = None
    Xi = None
    for c in range(C):
        gr = aug_r[c][ref_col:ref_col + 1, :]
        gi = aug_i[c][ref_col:ref_col + 1, :]
        if c == ref_mic_idx:
            gr = gr - inv_s2
            gi = gi - inv_s2
        hr, hi = _cmul(invl_r, invl_i, gr, gi)          # (1, Fb)
        yr = y_ref[0, 0, c, :, :]                       # (T, Fb)
        yi = y_ref[0, 1, c, :, :]
        hr = jnp.broadcast_to(hr, yr.shape)
        hi = jnp.broadcast_to(hi, yr.shape)
        tr = hr * yr + hi * yi                          # Re(conj(H_c) * y_c)
        ti = hr * yi - hi * yr                          # Im(conj(H_c) * y_c)
        Xr = tr if Xr is None else Xr + tr
        Xi = ti if Xi is None else Xi + ti

    out_ref[0, 0, 0, :, :] = Xr
    out_ref[0, 1, 0, :, :] = Xi


def _vmem_capacity_bytes():
    """Generation-aware VMEM capacity; conservative (v7x per-TC) fallback."""
    try:
        cap = int(pltpu.get_tpu_info().vmem_capacity_bytes)
        if cap > 0:
            return cap
    except Exception:
        pass
    return 64 * 1024 * 1024


def _pick_f_block(C, T, F_pad, N, budget_bytes):
    """Largest lane-aligned F tile whose working set (pipeline buffers + kernel
    intermediates) fits the budget, while keeping >= ~4 grid steps when possible."""
    cands = sorted(
        {c for c in (2048, 1024, 512, 256, 128) if F_pad % c == 0} | {F_pad},
        reverse=True)

    def footprint(blk):
        # 2 inputs + 1 output, double-buffered by the BlockSpec pipeline.
        pipe = 2 * (2 * (2 * C * T * blk) + (2 * T * blk)) * 4
        # Kernel-internal live values: a few (T, blk) cov temporaries, the packed
        # augmented rows (~4*C^2 complex), cov entries feeding them.
        interm = (6 * T + 8 * C * C + 4 * C) * blk * 4
        return pipe + interm

    blk = cands[-1]
    for c in cands:
        if footprint(c) <= budget_bytes:
            blk = c
            break

    # Keep enough grid steps for v7x's 2 TensorCores and the 2-deep pipeline.
    while N * (F_pad // blk) < 4:
        smaller = [c for c in cands if c < blk]
        if not smaller:
            break
        blk = max(smaller)
    return blk


def mvdr_oracle_no_steering_vector(mixture, noise, ref_mic_idx=0):
    """mixture/noise: (N, 2, C, T, F) float32 RI-stacked. Returns {'est_target': (N,2,1,T,F)}."""
    mixture = jnp.asarray(mixture, dtype=jnp.float32)
    noise = jnp.asarray(noise, dtype=jnp.float32)
    N, _, C, T, F = mixture.shape

    # Pad F to a lane multiple so every tile is lane-dense (typical STFT F = 257/513).
    F_pad = ((F + LANE - 1) // LANE) * LANE
    if F_pad != F:
        pad = [(0, 0)] * 4 + [(0, F_pad - F)]
        mixture_p = jnp.pad(mixture, pad)
        noise_p = jnp.pad(noise, pad)
    else:
        mixture_p, noise_p = mixture, noise

    cap = _vmem_capacity_bytes()
    budget = int(cap * 0.6)                                   # ~38 MiB v7x, ~76 MiB v5e/v6e
    vmem_limit = min(int(cap * 0.75), 100 * 1024 * 1024)      # ~48 MiB v7x, ~96 MiB v5e/v6e

    f_blk = _pick_f_block(C, T, F_pad, N, budget)
    grid = (N, F_pad // f_blk)

    in_spec = pl.BlockSpec((1, 2, C, T, f_blk), lambda n, f: (n, 0, 0, 0, f))
    out_spec = pl.BlockSpec((1, 2, 1, T, f_blk), lambda n, f: (n, 0, 0, 0, f))

    kern = functools.partial(_mvdr_kernel, C=C, T=T, ref_mic_idx=ref_mic_idx)
    est = pl.pallas_call(
        kern,
        out_shape=jax.ShapeDtypeStruct((N, 2, 1, T, F_pad), jnp.float32),
        grid=grid,
        in_specs=[in_spec, in_spec],
        out_specs=out_spec,
        compiler_params=pltpu.CompilerParams(
            dimension_semantics=("parallel", "parallel"),
            vmem_limit_bytes=vmem_limit,
        ),
    )(mixture_p, noise_p)

    if F_pad != F:
        est = est[..., :F]
    return {"est_target": est}


def forward(inputs, ref_mic_idx=0):
    """Mirrors the torch module interface: dict with 'mixture', 'noise', 'target' (unused)."""
    return mvdr_oracle_no_steering_vector(inputs["mixture"], inputs["noise"], ref_mic_idx)


def _reference(mixture, noise, ref_mic_idx=0):
    """Pure numpy (complex, f64) reference of the torch forward pass."""
    y = np.asarray(mixture, dtype=np.float64)
    v = np.asarray(noise, dtype=np.float64)
    N, _, C, T, F = y.shape
    yc = y[:, 0] + 1j * y[:, 1]  # (N, C, T, F)
    vc = v[:, 0] + 1j * v[:, 1]
    eye = np.eye(C)
    est = np.zeros((N, 2, 1, T, F))
    for n in range(N):
        for f in range(F):
            Yv = yc[n, :, :, f]  # (C, T)
            Vv = vc[n, :, :, f]
            phi_y = (Yv @ Yv.conj().T) / T
            phi_v = (Vv @ Vv.conj().T) / T + (0.001 / np.sqrt(2)) * (1 + 1j) * eye
            G = np.linalg.inv(phi_v) @ phi_y
            l = np.trace(G) - (C / np.sqrt(2)) * (1 + 1j)
            H = (1.0 / l) * (G - (1 + 1j) / np.sqrt(2) * eye)[:, ref_mic_idx]
            X = np.conj(H) @ Yv  # (T,)
            est[n, 0, 0, :, f] = X.real
            est[n, 1, 0, :, f] = X.imag
    return est


if __name__ == "__main__":
    key = jax.random.PRNGKey(0)
    N, C, T, F = 2, 4, 8, 16
    k1, k2, k3 = jax.random.split(key, 3)
    inputs = {
        "mixture": jax.random.normal(k1, (N, 2, C, T, F), dtype=jnp.float32),
        "noise": 0.5 * jax.random.normal(k2, (N, 2, C, T, F), dtype=jnp.float32),
        "target": jax.random.normal(k3, (N, 2, C, T, F), dtype=jnp.float32),  # unused by forward math
    }

    out = forward(inputs, ref_mic_idx=0)
    est = jax.block_until_ready(out["est_target"])
    assert est.shape == (N, 2, 1, T, F)

    ref = _reference(inputs["mixture"], inputs["noise"], ref_mic_idx=0)
    np.testing.assert_allclose(np.asarray(est), ref, rtol=5e-3, atol=1e-3)
    print("KERNEL_OK")
</pallas_src>

<mosaic_0001>
module attributes {stable_mosaic.version = 11 : i64} {
  func.func @_mvdr_kernel(%arg0: i32, %arg1: i32, %arg2: memref<1x2x4x8x128xf32, #tpu.memory_space<vmem>>, %arg3: memref<1x2x4x8x128xf32, #tpu.memory_space<vmem>>, %arg4: memref<1x2x1x8x128xf32, #tpu.memory_space<vmem>>) attributes {dimension_semantics = [#tpu.dimension_semantics<parallel>, #tpu.dimension_semantics<parallel>], iteration_bounds = array<i64: 2, 1>, scalar_prefetch = 0 : i64, scratch_operands = 0 : i64, tpu.core_type = #tpu.core_type<tc>, window_params = [{transform_indices = @transform_0, window_bounds = array<i64: 1, 2, 4, 8, 128>}, {transform_indices = @transform_1, window_bounds = array<i64: 1, 2, 4, 8, 128>}, {transform_indices = @transform_2, window_bounds = array<i64: 1, 2, 1, 8, 128>}]} {
    %c0 = arith.constant 0 : index
    %c0_0 = arith.constant 0 : index
    %c0_1 = arith.constant 0 : index
    %c0_2 = arith.constant 0 : index
    %c0_3 = arith.constant 0 : index
    %0 = vector.load %arg2[%c0, %c0_0, %c0_1, %c0_2, %c0_3] : memref<1x2x4x8x128xf32, #tpu.memory_space<vmem>>, vector<1x1x1x8x128xf32>
    %1 = vector.shape_cast %0 : vector<1x1x1x8x128xf32> to vector<8x128xf32>
    %c0_4 = arith.constant 0 : index
    %c1 = arith.constant 1 : index
    %c0_5 = arith.constant 0 : index
    %c0_6 = arith.constant 0 : index
    %c0_7 = arith.constant 0 : index
    %2 = vector.load %arg2[%c0_4, %c1, %c0_5, %c0_6, %c0_7] : memref<1x2x4x8x128xf32, #tpu.memory_space<vmem>>, vector<1x1x1x8x128xf32>
    %3 = vector.shape_cast %2 : vector<1x1x1x8x128xf32> to vector<8x128xf32>
    %4 = arith.mulf %1, %1 : vector<8x128xf32>
    %5 = arith.mulf %3, %3 : vector<8x128xf32>
    %6 = arith.addf %4, %5 : vector<8x128xf32>
    %cst = arith.constant dense<0.000000e+00> : vector<128xf32>
    %7 = vector.multi_reduction <add>, %6, %cst [0] : vector<8x128xf32> to vector<128xf32>
    %8 = vector.shape_cast %7 : vector<128xf32> to vector<1x128xf32>
    %cst_8 = arith.constant 1.250000e-01 : f32
    %9 = vector.broadcast %cst_8 : f32 to vector<1x128xf32>
    %10 = arith.mulf %8, %9 : vector<1x128xf32>
    %cst_9 = arith.constant 0.000000e+00 : f32
    %11 = vector.broadcast %cst_9 : f32 to vector<1x128xf32>
    %12 = arith.addf %10, %11 : vector<1x128xf32>
    %cst_10 = arith.constant 0.000000e+00 : f32
    %13 = vector.broadcast %cst_10 : f32 to vector<1x128xf32>
    %c0_11 = arith.constant 0 : index
    %c0_12 = arith.constant 0 : index
    %c1_13 = arith.constant 1 : index
    %c0_14 = arith.constant 0 : index
    %c0_15 = arith.constant 0 : index
    %14 = vector.load %arg2[%c0_11, %c0_12, %c1_13, %c0_14, %c0_15] : memref<1x2x4x8x128xf32, #tpu.memory_space<vmem>>, vector<1x1x1x8x128xf32>
    %15 = vector.shape_cast %14 : vector<1x1x1x8x128xf32> to vector<8x128xf32>
    %c0_16 = arith.constant 0 : index
    %c1_17 = arith.constant 1 : index
    %c1_18 = arith.constant 1 : index
    %c0_19 = arith.constant 0 : index
    %c0_20 = arith.constant 0 : index
    %16 = vector.load %arg2[%c0_16, %c1_17, %c1_18, %c0_19, %c0_20] : memref<1x2x4x8x128xf32, #tpu.memory_space<vmem>>, vector<1x1x1x8x128xf32>
    %17 = vector.shape_cast %16 : vector<1x1x1x8x128xf32> to vector<8x128xf32>
    %18 = arith.mulf %1, %15 : vector<8x128xf32>
    %19 = arith.mulf %3, %17 : vector<8x128xf32>
    %20 = arith.addf %18, %19 : vector<8x128xf32>
    %cst_21 = arith.constant dense<0.000000e+00> : vector<128xf32>
    %21 = vector.multi_reduction <add>, %20, %cst_21 [0] : vector<8x128xf32> to vector<128xf32>
    %22 = vector.shape_cast %21 : vector<128xf32> to vector<1x128xf32>
    %cst_22 = arith.constant 1.250000e-01 : f32
    %23 = vector.broadcast %cst_22 : f32 to vector<1x128xf32>
    %24 = arith.mulf %22, %23 : vector<1x128xf32>
    %25 = arith.mulf %3, %15 : vector<8x128xf32>
    %26 = arith.mulf %1, %17 : vector<8x128xf32>
    %27 = arith.subf %25, %26 : vector<8x128xf32>
    %cst_23 = arith.constant dense<0.000000e+00> : vector<128xf32>
    %28 = vector.multi_reduction <add>, %27, %cst_23 [0] : vector<8x128xf32> to vector<128xf32>
    %29 = vector.shape_cast %28 : vector<128xf32> to vector<1x128xf32>
    %cst_24 = arith.constant 1.250000e-01 : f32
    %30 = vector.broadcast %cst_24 : f32 to vector<1x128xf32>
    %31 = arith.mulf %29, %30 : vector<1x128xf32>
    %cst_25 = arith.constant 0.000000e+00 : f32
    %32 = vector.broadcast %cst_25 : f32 to vector<1x128xf32>
    %33 = arith.subf %32, %31 : vector<1x128xf32>
    %c0_26 = arith.constant 0 : index
    %c0_27 = arith.constant 0 : index
    %c2 = arith.constant 2 : index
    %c0_28 = arith.constant 0 : index
    %c0_29 = arith.constant 0 : index
    %34 = vector.load %arg2[%c0_26, %c0_27, %c2, %c0_28, %c0_29] : memref<1x2x4x8x128xf32, #tpu.memory_space<vmem>>, vector<1x1x1x8x128xf32>
    %35 = vector.shape_cast %34 : vector<1x1x1x8x128xf32> to vector<8x128xf32>
    %c0_30 = arith.constant 0 : index
    %c1_31 = arith.constant 1 : index
    %c2_32 = arith.constant 2 : index
    %c0_33 = arith.constant 0 : index
    %c0_34 = arith.constant 0 : index
    %36 = vector.load %arg2[%c0_30, %c1_31, %c2_32, %c0_33, %c0_34] : memref<1x2x4x8x128xf32, #tpu.memory_space<vmem>>, vector<1x1x1x8x128xf32>
    %37 = vector.shape_cast %36 : vector<1x1x1x8x128xf32> to vector<8x128xf32>
    %38 = arith.mulf %1, %35 : vector<8x128xf32>
    %39 = arith.mulf %3, %37 : vector<8x128xf32>
    %40 = arith.addf %38, %39 : vector<8x128xf32>
    %cst_35 = arith.constant dense<0.000000e+00> : vector<128xf32>
    %41 = vector.multi_reduction <add>, %40, %cst_35 [0] : vector<8x128xf32> to vector<128xf32>
    %42 = vector.shape_cast %41 : vector<128xf32> to vector<1x128xf32>
    %cst_36 = arith.constant 1.250000e-01 : f32
    %43 = vector.broadcast %cst_36 : f32 to vector<1x128xf32>
    %44 = arith.mulf %42, %43 : vector<1x128xf32>
    %45 = arith.mulf %3, %35 : vector<8x128xf32>
    %46 = arith.mulf %1, %37 : vector<8x128xf32>
    %47 = arith.subf %45, %46 : vector<8x128xf32>
    %cst_37 = arith.constant dense<0.000000e+00> : vector<128xf32>
    %48 = vector.multi_reduction <add>, %47, %cst_37 [0] : vector<8x128xf32> to vector<128xf32>
    %49 = vector.shape_cast %48 : vector<128xf32> to vector<1x128xf32>
    %cst_38 = arith.constant 1.250000e-01 : f32
    %50 = vector.broadcast %cst_38 : f32 to vector<1x128xf32>
    %51 = arith.mulf %49, %50 : vector<1x128xf32>
    %cst_39 = arith.constant 0.000000e+00 : f32
    %52 = vector.broadcast %cst_39 : f32 to vector<1x128xf32>
    %53 = arith.subf %52, %51 : vector<1x128xf32>
    %c0_40 = arith.constant 0 : index
    %c0_41 = arith.constant 0 : index
    %c3 = arith.constant 3 : index
    %c0_42 = arith.constant 0 : index
    %c0_43 = arith.constant 0 : index
    %54 = vector.load %arg2[%c0_40, %c0_41, %c3, %c0_42, %c0_43] : memref<1x2x4x8x128xf32, #tpu.memory_space<vmem>>, vector<1x1x1x8x128xf32>
    %55 = vector.shape_cast %54 : vector<1x1x1x8x128xf32> to vector<8x128xf32>
    %c0_44 = arith.constant 0 : index
    %c1_45 = arith.constant 1 : index
    %c3_46 = arith.constant 3 : index
    %c0_47 = arith.constant 0 : index
    %c0_48 = arith.constant 0 : index
    %56 = vector.load %arg2[%c0_44, %c1_45, %c3_46, %c0_47, %c0_48] : memref<1x2x4x8x128xf32, #tpu.memory_space<vmem>>, vector<1x1x1x8x128xf32>
    %57 = vector.shape_cast %56 : vector<1x1x1x8x128xf32> to vector<8x128xf32>
    %58 = arith.mulf %1, %55 : vector<8x128xf32>
    %59 = arith.mulf %3, %57 : vector<8x128xf32>
    %60 = arith.addf %58, %59 : vector<8x128xf32>
    %cst_49 = arith.constant dense<0.000000e+00> : vector<128xf32>
    %61 = vector.multi_reduction <add>, %60, %cst_49 [0] : vector<8x128xf32> to vector<128xf32>
    %62 = vector.shape_cast %61 : vector<128xf32> to vector<1x128xf32>
    %cst_50 = arith.constant 1.250000e-01 : f32
    %63 = vector.broadcast %cst_50 : f32 to vector<1x128xf32>
    %64 = arith.mulf %62, %63 : vector<1x128xf32>
    %65 = arith.mulf %3, %55 : vector<8x128xf32>
    %66 = arith.mulf %1, %57 : vector<8x128xf32>
    %67 = arith.subf %65, %66 : vector<8x128xf32>
    %cst_51 = arith.constant dense<0.000000e+00> : vector<128xf32>
    %68 = vector.multi_reduction <add>, %67, %cst_51 [0] : vector<8x128xf32> to vector<128xf32>
    %69 = vector.shape_cast %68 : vector<128xf32> to vector<1x128xf32>
    %cst_52 = arith.constant 1.250000e-01 : f32
    %70 = vector.broadcast %cst_52 : f32 to vector<1x128xf32>
    %71 = arith.mulf %69, %70 : vector<1x128xf32>
    %cst_53 = arith.constant 0.000000e+00 : f32
    %72 = vector.broadcast %cst_53 : f32 to vector<1x128xf32>
    %73 = arith.subf %72, %71 : vector<1x128xf32>
    %c0_54 = arith.constant 0 : index
    %c0_55 = arith.constant 0 : index
    %c1_56 = arith.constant 1 : index
    %c0_57 = arith.constant 0 : index
    %c0_58 = arith.constant 0 : index
    %74 = vector.load %arg2[%c0_54, %c0_55, %c1_56, %c0_57, %c0_58] : memref<1x2x4x8x128xf32, #tpu.memory_space<vmem>>, vector<1x1x1x8x128xf32>
    %75 = vector.shape_cast %74 : vector<1x1x1x8x128xf32> to vector<8x128xf32>
    %c0_59 = arith.constant 0 : index
    %c1_60 = arith.constant 1 : index
    %c1_61 = arith.constant 1 : index
    %c0_62 = arith.constant 0 : index
    %c0_63 = arith.constant 0 : index
    %76 = vector.load %arg2[%c0_59, %c1_60, %c1_61, %c0_62, %c0_63] : memref<1x2x4x8x128xf32, #tpu.memory_space<vmem>>, vector<1x1x1x8x128xf32>
    %77 = vector.shape_cast %76 : vector<1x1x1x8x128xf32> to vector<8x128xf32>
    %78 = arith.mulf %75, %75 : vector<8x128xf32>
    %79 = arith.mulf %77, %77 : vector<8x128xf32>
    %80 = arith.addf %78, %79 : vector<8x128xf32>
    %cst_64 = arith.constant dense<0.000000e+00> : vector<128xf32>
    %81 = vector.multi_reduction <add>, %80, %cst_64 [0] : vector<8x128xf32> to vector<128xf32>
    %82 = vector.shape_cast %81 : vector<128xf32> to vector<1x128xf32>
    %cst_65 = arith.constant 1.250000e-01 : f32
    %83 = vector.broadcast %cst_65 : f32 to vector<1x128xf32>
    %84 = arith.mulf %82, %83 : vector<1x128xf32>
    %cst_66 = arith.constant 0.000000e+00 : f32
    %85 = vector.broadcast %cst_66 : f32 to vector<1x128xf32>
    %86 = arith.addf %84, %85 : vector<1x128xf32>
    %cst_67 = arith.constant 0.000000e+00 : f32
    %87 = vector.broadcast %cst_67 : f32 to vector<1x128xf32>
    %c0_68 = arith.constant 0 : index
    %c0_69 = arith.constant 0 : index
    %c2_70 = arith.constant 2 : index
    %c0_71 = arith.constant 0 : index
    %c0_72 = arith.constant 0 : index
    %88 = vector.load %arg2[%c0_68, %c0_69, %c2_70, %c0_71, %c0_72] : memref<1x2x4x8x128xf32, #tpu.memory_space<vmem>>, vector<1x1x1x8x128xf32>
    %89 = vector.shape_cast %88 : vector<1x1x1x8x128xf32> to vector<8x128xf32>
    %c0_73 = arith.constant 0 : index
    %c1_74 = arith.constant 1 : index
    %c2_75 = arith.constant 2 : index
    %c0_76 = arith.constant 0 : index
    %c0_77 = arith.constant 0 : index
    %90 = vector.load %arg2[%c0_73, %c1_74, %c2_75, %c0_76, %c0_77] : memref<1x2x4x8x128xf32, #tpu.memory_space<vmem>>, vector<1x1x1x8x128xf32>
    %91 = vector.shape_cast %90 : vector<1x1x1x8x128xf32> to vector<8x128xf32>
    %92 = arith.mulf %75, %89 : vector<8x128xf32>
    %93 = arith.mulf %77, %91 : vector<8x128xf32>
    %94 = arith.addf %92, %93 : vector<8x128xf32>
    %cst_78 = arith.constant dense<0.000000e+00> : vector<128xf32>
    %95 = vector.multi_reduction <add>, %94, %cst_78 [0] : vector<8x128xf32> to vector<128xf32>
    %96 = vector.shape_cast %95 : vector<128xf32> to vector<1x128xf32>
    %cst_79 = arith.constant 1.250000e-01 : f32
    %97 = vector.broadcast %cst_79 : f32 to vector<1x128xf32>
    %98 = arith.mulf %96, %97 : vector<1x128xf32>
    %99 = arith.mulf %77, %89 : vector<8x128xf32>
    %100 = arith.mulf %75, %91 : vector<8x128xf32>
    %101 = arith.subf %99, %100 : vector<8x128xf32>
    %cst_80 = arith.constant dense<0.000000e+00> : vector<128xf32>
    %102 = vector.multi_reduction <add>, %101, %cst_80 [0] : vector<8x128xf32> to vector<128xf32>
    %103 = vector.shape_cast %102 : vector<128xf32> to vector<1x128xf32>
    %cst_81 = arith.constant 1.250000e-01 : f32
    %104 = vector.broadcast %cst_81 : f32 to vector<1x128xf32>
    %105 = arith.mulf %103, %104 : vector<1x128xf32>
    %cst_82 = arith.constant 0.000000e+00 : f32
    %106 = vector.broadcast %cst_82 : f32 to vector<1x128xf32>
    %107 = arith.subf %106, %105 : vector<1x128xf32>
    %c0_83 = arith.constant 0 : index
    %c0_84 = arith.constant 0 : index
    %c3_85 = arith.constant 3 : index
    %c0_86 = arith.constant 0 : index
    %c0_87 = arith.constant 0 : index
    %108 = vector.load %arg2[%c0_83, %c0_84, %c3_85, %c0_86, %c0_87] : memref<1x2x4x8x128xf32, #tpu.memory_space<vmem>>, vector<1x1x1x8x128xf32>
    %109 = vector.shape_cast %108 : vector<1x1x1x8x128xf32> to vector<8x128xf32>
    %c0_88 = arith.constant 0 : index
    %c1_89 = arith.constant 1 : index
    %c3_90 = arith.constant 3 : index
    %c0_91 = arith.constant 0 : index
    %c0_92 = arith.constant 0 : index
    %110 = vector.load %arg2[%c0_88, %c1_89, %c3_90, %c0_91, %c0_92] : memref<1x2x4x8x128xf32, #tpu.memory_space<vmem>>, vector<1x1x1x8x128xf32>
    %111 = vector.shape_cast %110 : vector<1x1x1x8x128xf32> to vector<8x128xf32>
    %112 = arith.mulf %75, %109 : vector<8x128xf32>
    %113 = arith.mulf %77, %111 : vector<8x128xf32>
    %114 = arith.addf %112, %113 : vector<8x128xf32>
    %cst_93 = arith.constant dense<0.000000e+00> : vector<128xf32>
    %115 = vector.multi_reduction <add>, %114, %cst_93 [0] : vector<8x128xf32> to vector<128xf32>
    %116 = vector.shape_cast %115 : vector<128xf32> to vector<1x128xf32>
    %cst_94 = arith.constant 1.250000e-01 : f32
    %117 = vector.broadcast %cst_94 : f32 to vector<1x128xf32>
    %118 = arith.mulf %116, %117 : vector<1x128xf32>
    %119 = arith.mulf %77, %109 : vector<8x128xf32>
    %120 = arith.mulf %75, %111 : vector<8x128xf32>
    %121 = arith.subf %119, %120 : vector<8x128xf32>
    %cst_95 = arith.constant dense<0.000000e+00> : vector<128xf32>
    %122 = vector.multi_reduction <add>, %121, %cst_95 [0] : vector<8x128xf32> to vector<128xf32>
    %123 = vector.shape_cast %122 : vector<128xf32> to vector<1x128xf32>
    %cst_96 = arith.constant 1.250000e-01 : f32
    %124 = vector.broadcast %cst_96 : f32 to vector<1x128xf32>
    %125 = arith.mulf %123, %124 : vector<1x128xf32>
    %cst_97 = arith.constant 0.000000e+00 : f32
    %126 = vector.broadcast %cst_97 : f32 to vector<1x128xf32>
    %127 = arith.subf %126, %125 : vector<1x128xf32>
    %c0_98 = arith.constant 0 : index
    %c0_99 = arith.constant 0 : index
    %c2_100 = arith.constant 2 : index
    %c0_101 = arith.constant 0 : index
    %c0_102 = arith.constant 0 : index
    %128 = vector.load %arg2[%c0_98, %c0_99, %c2_100, %c0_101, %c0_102] : memref<1x2x4x8x128xf32, #tpu.memory_space<vmem>>, vector<1x1x1x8x128xf32>
    %129 = vector.shape_cast %128 : vector<1x1x1x8x128xf32> to vector<8x128xf32>
    %c0_103 = arith.constant 0 : index
    %c1_104 = arith.constant 1 : index
    %c2_105 = arith.constant 2 : index
    %c0_106 = arith.constant 0 : index
    %c0_107 = arith.constant 0 : index
    %130 = vector.load %arg2[%c0_103, %c1_104, %c2_105, %c0_106, %c0_107] : memref<1x2x4x8x128xf32, #tpu.memory_space<vmem>>, vector<1x1x1x8x128xf32>
    %131 = vector.shape_cast %130 : vector<1x1x1x8x128xf32> to vector<8x128xf32>
    %132 = arith.mulf %129, %129 : vector<8x128xf32>
    %133 = arith.mulf %131, %131 : vector<8x128xf32>
    %134 = arith.addf %132, %133 : vector<8x128xf32>
    %cst_108 = arith.constant dense<0.000000e+00> : vector<128xf32>
    %135 = vector.multi_reduction <add>, %134, %cst_108 [0] : vector<8x128xf32> to vector<128xf32>
    %136 = vector.shape_cast %135 : vector<128xf32> to vector<1x128xf32>
    %cst_109 = arith.constant 1.250000e-01 : f32
    %137 = vector.broadcast %cst_109 : f32 to vector<1x128xf32>
    %138 = arith.mulf %136, %137 : vector<1x128xf32>
    %cst_110 = arith.constant 0.000000e+00 : f32
    %139 = vector.broadcast %cst_110 : f32 to vector<1x128xf32>
    %140 = arith.addf %138, %139 : vector<1x128xf32>
    %cst_111 = arith.constant 0.000000e+00 : f32
    %141 = vector.broadcast %cst_111 : f32 to vector<1x128xf32>
    %c0_112 = arith.constant 0 : index
    %c0_113 = arith.constant 0 : index
    %c3_114 = arith.constant 3 : index
    %c0_115 = arith.constant 0 : index
    %c0_116 = arith.constant 0 : index
    %142 = vector.load %arg2[%c0_112, %c0_113, %c3_114, %c0_115, %c0_116] : memref<1x2x4x8x128xf32, #tpu.memory_space<vmem>>, vector<1x1x1x8x128xf32>
    %143 = vector.shape_cast %142 : vector<1x1x1x8x128xf32> to vector<8x128xf32>
    %c0_117 = arith.constant 0 : index
    %c1_118 = arith.constant 1 : index
    %c3_119 = arith.constant 3 : index
    %c0_120 = arith.constant 0 : index
    %c0_121 = arith.constant 0 : index
    %144 = vector.load %arg2[%c0_117, %c1_118, %c3_119, %c0_120, %c0_121] : memref<1x2x4x8x128xf32, #tpu.memory_space<vmem>>, vector<1x1x1x8x128xf32>
    %145 = vector.shape_cast %144 : vector<1x1x1x8x128xf32> to vector<8x128xf32>
    %146 = arith.mulf %129, %143 : vector<8x128xf32>
    %147 = arith.mulf %131, %145 : vector<8x128xf32>
    %148 = arith.addf %146, %147 : vector<8x128xf32>
    %cst_122 = arith.constant dense<0.000000e+00> : vector<128xf32>
    %149 = vector.multi_reduction <add>, %148, %cst_122 [0] : vector<8x128xf32> to vector<128xf32>
    %150 = vector.shape_cast %149 : vector<128xf32> to vector<1x128xf32>
    %cst_123 = arith.constant 1.250000e-01 : f32
    %151 = vector.broadcast %cst_123 : f32 to vector<1x128xf32>
    %152 = arith.mulf %150, %151 : vector<1x128xf32>
    %153 = arith.mulf %131, %143 : vector<8x128xf32>
    %154 = arith.mulf %129, %145 : vector<8x128xf32>
    %155 = arith.subf %153, %154 : vector<8x128xf32>
    %cst_124 = arith.constant dense<0.000000e+00> : vector<128xf32>
    %156 = vector.multi_reduction <add>, %155, %cst_124 [0] : vector<8x128xf32> to vector<128xf32>
    %157 = vector.shape_cast %156 : vector<128xf32> to vector<1x128xf32>
    %cst_125 = arith.constant 1.250000e-01 : f32
    %158 = vector.broadcast %cst_125 : f32 to vector<1x128xf32>
    %159 = arith.mulf %157, %158 : vector<1x128xf32>
    %cst_126 = arith.constant 0.000000e+00 : f32
    %160 = vector.broadcast %cst_126 : f32 to vector<1x128xf32>
    %161 = arith.subf %160, %159 : vector<1x128xf32>
    %c0_127 = arith.constant 0 : index
    %c0_128 = arith.constant 0 : index
    %c3_129 = arith.constant 3 : index
    %c0_130 = arith.constant 0 : index
    %c0_131 = arith.constant 0 : index
    %162 = vector.load %arg2[%c0_127, %c0_128, %c3_129, %c0_130, %c0_131] : memref<1x2x4x8x128xf32, #tpu.memory_space<vmem>>, vector<1x1x1x8x128xf32>
    %163 = vector.shape_cast %162 : vector<1x1x1x8x128xf32> to vector<8x128xf32>
    %c0_132 = arith.constant 0 : index
    %c1_133 = arith.constant 1 : index
    %c3_134 = arith.constant 3 : index
    %c0_135 = arith.constant 0 : index
    %c0_136 = arith.constant 0 : index
    %164 = vector.load %arg2[%c0_132, %c1_133, %c3_134, %c0_135, %c0_136] : memref<1x2x4x8x128xf32, #tpu.memory_space<vmem>>, vector<1x1x1x8x128xf32>
    %165 = vector.shape_cast %164 : vector<1x1x1x8x128xf32> to vector<8x128xf32>
    %166 = arith.mulf %163, %163 : vector<8x128xf32>
    %167 = arith.mulf %165, %165 : vector<8x128xf32>
    %168 = arith.addf %166, %167 : vector<8x128xf32>
    %cst_137 = arith.constant dense<0.000000e+00> : vector<128xf32>
    %169 = vector.multi_reduction <add>, %168, %cst_137 [0] : vector<8x128xf32> to vector<128xf32>
    %170 = vector.shape_cast %169 : vector<128xf32> to vector<1x128xf32>
    %cst_138 = arith.constant 1.250000e-01 : f32
    %171 = vector.broadcast %cst_138 : f32 to vector<1x128xf32>
    %172 = arith.mulf %170, %171 : vector<1x128xf32>
    %cst_139 = arith.constant 0.000000e+00 : f32
    %173 = vector.broadcast %cst_139 : f32 to vector<1x128xf32>
    %174 = arith.addf %172, %173 : vector<1x128xf32>
    %cst_140 = arith.constant 0.000000e+00 : f32
    %175 = vector.broadcast %cst_140 : f32 to vector<1x128xf32>
    %c0_141 = arith.constant 0 : index
    %c0_142 = arith.constant 0 : index
    %c0_143 = arith.constant 0 : index
    %c0_144 = arith.constant 0 : index
    %c0_145 = arith.constant 0 : index
    %176 = vector.load %arg3[%c0_141, %c0_142, %c0_143, %c0_144, %c0_145] : memref<1x2x4x8x128xf32, #tpu.memory_space<vmem>>, vector<1x1x1x8x128xf32>
    %177 = vector.shape_cast %176 : vector<1x1x1x8x128xf32> to vector<8x128xf32>
    %c0_146 = arith.constant 0 : index
    %c1_147 = arith.constant 1 : index
    %c0_148 = arith.constant 0 : index
    %c0_149 = arith.constant 0 : index
    %c0_150 = arith.constant 0 : index
    %178 = vector.load %arg3[%c0_146, %c1_147, %c0_148, %c0_149, %c0_150] : memref<1x2x4x8x128xf32, #tpu.memory_space<vmem>>, vector<1x1x1x8x128xf32>
    %179 = vector.shape_cast %178 : vector<1x1x1x8x128xf32> to vector<8x128xf32>
    %180 = arith.mulf %177, %177 : vector<8x128xf32>
    %181 = arith.mulf %179, %179 : vector<8x128xf32>
    %182 = arith.addf %180, %181 : vector<8x128xf32>
    %cst_151 = arith.constant dense<0.000000e+00> : vector<128xf32>
    %183 = vector.multi_reduction <add>, %182, %cst_151 [0] : vector<8x128xf32> to vector<128xf32>
    %184 = vector.shape_cast %183 : vector<128xf32> to vector<1x128xf32>
    %cst_152 = arith.constant 1.250000e-01 : f32
    %185 = vector.broadcast %cst_152 : f32 to vector<1x128xf32>
    %186 = arith.mulf %184, %185 : vector<1x128xf32>
    %cst_153 = arith.constant 7.07106781E-4 : f32
    %187 = vector.broadcast %cst_153 : f32 to vector<1x128xf32>
    %188 = arith.addf %186, %187 : vector<1x128xf32>
    %cst_154 = arith.constant 7.07106781E-4 : f32
    %189 = vector.broadcast %cst_154 : f32 to vector<1x128xf32>
    %c0_155 = arith.constant 0 : index
    %c0_156 = arith.constant 0 : index
    %c1_157 = arith.constant 1 : index
    %c0_158 = arith.constant 0 : index
    %c0_159 = arith.constant 0 : index
    %190 = vector.load %arg3[%c0_155, %c0_156, %c1_157, %c0_158, %c0_159] : memref<1x2x4x8x128xf32, #tpu.memory_space<vmem>>, vector<1x1x1x8x128xf32>
    %191 = vector.shape_cast %190 : vector<1x1x1x8x128xf32> to vector<8x128xf32>
    %c0_160 = arith.constant 0 : index
    %c1_161 = arith.constant 1 : index
    %c1_162 = arith.constant 1 : index
    %c0_163 = arith.constant 0 : index
    %c0_164 = arith.constant 0 : index
    %192 = vector.load %arg3[%c0_160, %c1_161, %c1_162, %c0_163, %c0_164] : memref<1x2x4x8x128xf32, #tpu.memory_space<vmem>>, vector<1x1x1x8x128xf32>
    %193 = vector.shape_cast %192 : vector<1x1x1x8x128xf32> to vector<8x128xf32>
    %194 = arith.mulf %177, %191 : vector<8x128xf32>
    %195 = arith.mulf %179, %193 : vector<8x128xf32>
    %196 = arith.addf %194, %195 : vector<8x128xf32>
    %cst_165 = arith.constant dense<0.000000e+00> : vector<128xf32>
    %197 = vector.multi_reduction <add>, %196, %cst_165 [0] : vector<8x128xf32> to vector<128xf32>
    %198 = vector.shape_cast %197 : vector<128xf32> to vector<1x128xf32>
    %cst_166 = arith.constant 1.250000e-01 : f32
    %199 = vector.broadcast %cst_166 : f32 to vector<1x128xf32>
    %200 = arith.mulf %198, %199 : vector<1x128xf32>
    %201 = arith.mulf %179, %191 : vector<8x128xf32>
    %202 = arith.mulf %177, %193 : vector<8x128xf32>
    %203 = arith.subf %201, %202 : vector<8x128xf32>
    %cst_167 = arith.constant dense<0.000000e+00> : vector<128xf32>
    %204 = vector.multi_reduction <add>, %203, %cst_167 [0] : vector<8x128xf32> to vector<128xf32>
    %205 = vector.shape_cast %204 : vector<128xf32> to vector<1x128xf32>
    %cst_168 = arith.constant 1.250000e-01 : f32
    %206 = vector.broadcast %cst_168 : f32 to vector<1x128xf32>
    %207 = arith.mulf %205, %206 : vector<1x128xf32>
    %cst_169 = arith.constant 0.000000e+00 : f32
    %208 = vector.broadcast %cst_169 : f32 to vector<1x128xf32>
    %209 = arith.subf %208, %207 : vector<1x128xf32>
    %c0_170 = arith.constant 0 : index
    %c0_171 = arith.constant 0 : index
    %c2_172 = arith.constant 2 : index
    %c0_173 = arith.constant 0 : index
    %c0_174 = arith.constant 0 : index
    %210 = vector.load %arg3[%c0_170, %c0_171, %c2_172, %c0_173, %c0_174] : memref<1x2x4x8x128xf32, #tpu.memory_space<vmem>>, vector<1x1x1x8x128xf32>
    %211 = vector.shape_cast %210 : vector<1x1x1x8x128xf32> to vector<8x128xf32>
    %c0_175 = arith.constant 0 : index
    %c1_176 = arith.constant 1 : index
    %c2_177 = arith.constant 2 : index
    %c0_178 = arith.constant 0 : index
    %c0_179 = arith.constant 0 : index
    %212 = vector.load %arg3[%c0_175, %c1_176, %c2_177, %c0_178, %c0_179] : memref<1x2x4x8x128xf32, #tpu.memory_space<vmem>>, vector<1x1x1x8x128xf32>
    %213 = vector.shape_cast %212 : vector<1x1x1x8x128xf32> to vector<8x128xf32>
    %214 = arith.mulf %177, %211 : vector<8x128xf32>
    %215 = arith.mulf %179, %213 : vector<8x128xf32>
    %216 = arith.addf %214, %215 : vector<8x128xf32>
    %cst_180 = arith.constant dense<0.000000e+00> : vector<128xf32>
    %217 = vector.multi_reduction <add>, %216, %cst_180 [0] : vector<8x128xf32> to vector<128xf32>
    %218 = vector.shape_cast %217 : vector<128xf32> to vector<1x128xf32>
    %cst_181 = arith.constant 1.250000e-01 : f32
    %219 = vector.broadcast %cst_181 : f32 to vector<1x128xf32>
    %220 = arith.mulf %218, %219 : vector<1x128xf32>
    %221 = arith.mulf %179, %211 : vector<8x128xf32>
    %222 = arith.mulf %177, %213 : vector<8x128xf32>
    %223 = arith.subf %221, %222 : vector<8x128xf32>
    %cst_182 = arith.constant dense<0.000000e+00> : vector<128xf32>
    %224 = vector.multi_reduction <add>, %223, %cst_182 [0] : vector<8x128xf32> to vector<128xf32>
    %225 = vector.shape_cast %224 : vector<128xf32> to vector<1x128xf32>
    %cst_183 = arith.constant 1.250000e-01 : f32
    %226 = vector.broadcast %cst_183 : f32 to vector<1x128xf32>
    %227 = arith.mulf %225, %226 : vector<1x128xf32>
    %cst_184 = arith.constant 0.000000e+00 : f32
    %228 = vector.broadcast %cst_184 : f32 to vector<1x128xf32>
    %229 = arith.subf %228, %227 : vector<1x128xf32>
    %c0_185 = arith.constant 0 : index
    %c0_186 = arith.constant 0 : index
    %c3_187 = arith.constant 3 : index
    %c0_188 = arith.constant 0 : index
    %c0_189 = arith.constant 0 : index
    %230 = vector.load %arg3[%c0_185, %c0_186, %c3_187, %c0_188, %c0_189] : memref<1x2x4x8x128xf32, #tpu.memory_space<vmem>>, vector<1x1x1x8x128xf32>
    %231 = vector.shape_cast %230 : vector<1x1x1x8x128xf32> to vector<8x128xf32>
    %c0_190 = arith.constant 0 : index
    %c1_191 = arith.constant 1 : index
    %c3_192 = arith.constant 3 : index
    %c0_193 = arith.constant 0 : index
    %c0_194 = arith.constant 0 : index
    %232 = vector.load %arg3[%c0_190, %c1_191, %c3_192, %c0_193, %c0_194] : memref<1x2x4x8x128xf32, #tpu.memory_space<vmem>>, vector<1x1x1x8x128xf32>
    %233 = vector.shape_cast %232 : vector<1x1x1x8x128xf32> to vector<8x128xf32>
    %234 = arith.mulf %177, %231 : vector<8x128xf32>
    %235 = arith.mulf %179, %233 : vector<8x128xf32>
    %236 = arith.addf %234, %235 : vector<8x128xf32>
    %cst_195 = arith.constant dense<0.000000e+00> : vector<128xf32>
    %237 = vector.multi_reduction <add>, %236, %cst_195 [0] : vector<8x128xf32> to vector<128xf32>
    %238 = vector.shape_cast %237 : vector<128xf32> to vector<1x128xf32>
    %cst_196 = arith.constant 1.250000e-01 : f32
    %239 = vector.broadcast %cst_196 : f32 to vector<1x128xf32>
    %240 = arith.mulf %238, %239 : vector<1x128xf32>
    %241 = arith.mulf %179, %231 : vector<8x128xf32>
    %242 = arith.mulf %177, %233 : vector<8x128xf32>
    %243 = arith.subf %241, %242 : vector<8x128xf32>
    %cst_197 = arith.constant dense<0.000000e+00> : vector<128xf32>
    %244 = vector.multi_reduction <add>, %243, %cst_197 [0] : vector<8x128xf32> to vector<128xf32>
    %245 = vector.shape_cast %244 : vector<128xf32> to vector<1x128xf32>
    %cst_198 = arith.constant 1.250000e-01 : f32
    %246 = vector.broadcast %cst_198 : f32 to vector<1x128xf32>
    %247 = arith.mulf %245, %246 : vector<1x128xf32>
    %cst_199 = arith.constant 0.000000e+00 : f32
    %248 = vector.broadcast %cst_199 : f32 to vector<1x128xf32>
    %249 = arith.subf %248, %247 : vector<1x128xf32>
    %c0_200 = arith.constant 0 : index
    %c0_201 = arith.constant 0 : index
    %c1_202 = arith.constant 1 : index
    %c0_203 = arith.constant 0 : index
    %c0_204 = arith.constant 0 : index
    %250 = vector.load %arg3[%c0_200, %c0_201, %c1_202, %c0_203, %c0_204] : memref<1x2x4x8x128xf32, #tpu.memory_space<vmem>>, vector<1x1x1x8x128xf32>
    %251 = vector.shape_cast %250 : vector<1x1x1x8x128xf32> to vector<8x128xf32>
    %c0_205 = arith.constant 0 : index
    %c1_206 = arith.constant 1 : index
    %c1_207 = arith.constant 1 : index
    %c0_208 = arith.constant 0 : index
    %c0_209 = arith.constant 0 : index
    %252 = vector.load %arg3[%c0_205, %c1_206, %c1_207, %c0_208, %c0_209] : memref<1x2x4x8x128xf32, #tpu.memory_space<vmem>>, vector<1x1x1x8x128xf32>
    %253 = vector.shape_cast %252 : vector<1x1x1x8x128xf32> to vector<8x128xf32>
    %254 = arith.mulf %251, %251 : vector<8x128xf32>
    %255 = arith.mulf %253, %253 : vector<8x128xf32>
    %256 = arith.addf %254, %255 : vector<8x128xf32>
    %cst_210 = arith.constant dense<0.000000e+00> : vector<128xf32>
    %257 = vector.multi_reduction <add>, %256, %cst_210 [0] : vector<8x128xf32> to vector<128xf32>
    %258 = vector.shape_cast %257 : vector<128xf32> to vector<1x128xf32>
    %cst_211 = arith.constant 1.250000e-01 : f32
    %259 = vector.broadcast %cst_211 : f32 to vector<1x128xf32>
    %260 = arith.mulf %258, %259 : vector<1x128xf32>
    %cst_212 = arith.constant 7.07106781E-4 : f32
    %261 = vector.broadcast %cst_212 : f32 to vector<1x128xf32>
    %262 = arith.addf %260, %261 : vector<1x128xf32>
    %cst_213 = arith.constant 7.07106781E-4 : f32
    %263 = vector.broadcast %cst_213 : f32 to vector<1x128xf32>
    %c0_214 = arith.constant 0 : index
    %c0_215 = arith.constant 0 : index
    %c2_216 = arith.constant 2 : index
    %c0_217 = arith.constant 0 : index
    %c0_218 = arith.constant 0 : index
    %264 = vector.load %arg3[%c0_214, %c0_215, %c2_216, %c0_217, %c0_218] : memref<1x2x4x8x128xf32, #tpu.memory_space<vmem>>, vector<1x1x1x8x128xf32>
    %265 = vector.shape_cast %264 : vector<1x1x1x8x128xf32> to vector<8x128xf32>
    %c0_219 = arith.constant 0 : index
    %c1_220 = arith.constant 1 : index
    %c2_221 = arith.constant 2 : index
    %c0_222 = arith.constant 0 : index
    %c0_223 = arith.constant 0 : index
    %266 = vector.load %arg3[%c0_219, %c1_220, %c2_221, %c0_222, %c0_223] : memref<1x2x4x8x128xf32, #tpu.memory_space<vmem>>, vector<1x1x1x8x128xf32>
    %267 = vector.shape_cast %266 : vector<1x1x1x8x128xf32> to vector<8x128xf32>
    %268 = arith.mulf %251, %265 : vector<8x128xf32>
    %269 = arith.mulf %253, %267 : vector<8x128xf32>
    %270 = arith.addf %268, %269 : vector<8x128xf32>
    %cst_224 = arith.constant dense<0.000000e+00> : vector<128xf32>
    %271 = vector.multi_reduction <add>, %270, %cst_224 [0] : vector<8x128xf32> to vector<128xf32>
    %272 = vector.shape_cast %271 : vector<128xf32> to vector<1x128xf32>
    %cst_225 = arith.constant 1.250000e-01 : f32
    %273 = vector.broadcast %cst_225 : f32 to vector<1x128xf32>
    %274 = arith.mulf %272, %273 : vector<1x128xf32>
    %275 = arith.mulf %253, %265 : vector<8x128xf32>
    %276 = arith.mulf %251, %267 : vector<8x128xf32>
    %277 = arith.subf %275, %276 : vector<8x128xf32>
    %cst_226 = arith.constant dense<0.000000e+00> : vector<128xf32>
    %278 = vector.multi_reduction <add>, %277, %cst_226 [0] : vector<8x128xf32> to vector<128xf32>
    %279 = vector.shape_cast %278 : vector<128xf32> to vector<1x128xf32>
    %cst_227 = arith.constant 1.250000e-01 : f32
    %280 = vector.broadcast %cst_227 : f32 to vector<1x128xf32>
    %281 = arith.mulf %279, %280 : vector<1x128xf32>
    %cst_228 = arith.constant 0.000000e+00 : f32
    %282 = vector.broadcast %cst_228 : f32 to vector<1x128xf32>
    %283 = arith.subf %282, %281 : vector<1x128xf32>
    %c0_229 = arith.constant 0 : index
    %c0_230 = arith.constant 0 : index
    %c3_231 = arith.constant 3 : index
    %c0_232 = arith.constant 0 : index
    %c0_233 = arith.constant 0 : index
    %284 = vector.load %arg3[%c0_229, %c0_230, %c3_231, %c0_232, %c0_233] : memref<1x2x4x8x128xf32, #tpu.memory_space<vmem>>, vector<1x1x1x8x128xf32>
    %285 = vector.shape_cast %284 : vector<1x1x1x8x128xf32> to vector<8x128xf32>
    %c0_234 = arith.constant 0 : index
    %c1_235 = arith.constant 1 : index
    %c3_236 = arith.constant 3 : index
    %c0_237 = arith.constant 0 : index
    %c0_238 = arith.constant 0 : index
    %286 = vector.load %arg3[%c0_234, %c1_235, %c3_236, %c0_237, %c0_238] : memref<1x2x4x8x128xf32, #tpu.memory_space<vmem>>, vector<1x1x1x8x128xf32>
    %287 = vector.shape_cast %286 : vector<1x1x1x8x128xf32> to vector<8x128xf32>
    %288 = arith.mulf %251, %285 : vector<8x128xf32>
    %289 = arith.mulf %253, %287 : vector<8x128xf32>
    %290 = arith.addf %288, %289 : vector<8x128xf32>
    %cst_239 = arith.constant dense<0.000000e+00> : vector<128xf32>
    %291 = vector.multi_reduction <add>, %290, %cst_239 [0] : vector<8x128xf32> to vector<128xf32>
    %292 = vector.shape_cast %291 : vector<128xf32> to vector<1x128xf32>
    %cst_240 = arith.constant 1.250000e-01 : f32
    %293 = vector.broadcast %cst_240 : f32 to vector<1x128xf32>
    %294 = arith.mulf %292, %293 : vector<1x128xf32>
    %295 = arith.mulf %253, %285 : vector<8x128xf32>
    %296 = arith.mulf %251, %287 : vector<8x128xf32>
    %297 = arith.subf %295, %296 : vector<8x128xf32>
    %cst_241 = arith.constant dense<0.000000e+00> : vector<128xf32>
    %298 = vector.multi_reduction <add>, %297, %cst_241 [0] : vector<8x128xf32> to vector<128xf32>
    %299 = vector.shape_cast %298 : vector<128xf32> to vector<1x128xf32>
    %cst_242 = arith.constant 1.250000e-01 : f32
    %300 = vector.broadcast %cst_242 : f32 to vector<1x128xf32>
    %301 = arith.mulf %299, %300 : vector<1x128xf32>
    %cst_243 = arith.constant 0.000000e+00 : f32
    %302 = vector.broadcast %cst_243 : f32 to vector<1x128xf32>
    %303 = arith.subf %302, %301 : vector<1x128xf32>
    %c0_244 = arith.constant 0 : index
    %c0_245 = arith.constant 0 : index
    %c2_246 = arith.constant 2 : index
    %c0_247 = arith.constant 0 : index
    %c0_248 = arith.constant 0 : index
    %304 = vector.load %arg3[%c0_244, %c0_245, %c2_246, %c0_247, %c0_248] : memref<1x2x4x8x128xf32, #tpu.memory_space<vmem>>, vector<1x1x1x8x128xf32>
    %305 = vector.shape_cast %304 : vector<1x1x1x8x128xf32> to vector<8x128xf32>
    %c0_249 = arith.constant 0 : index
    %c1_250 = arith.constant 1 : index
    %c2_251 = arith.constant 2 : index
    %c0_252 = arith.constant 0 : index
    %c0_253 = arith.constant 0 : index
    %306 = vector.load %arg3[%c0_249, %c1_250, %c2_251, %c0_252, %c0_253] : memref<1x2x4x8x128xf32, #tpu.memory_space<vmem>>, vector<1x1x1x8x128xf32>
    %307 = vector.shape_cast %306 : vector<1x1x1x8x128xf32> to vector<8x128xf32>
    %308 = arith.mulf %305, %305 : vector<8x128xf32>
    %309 = arith.mulf %307, %307 : vector<8x128xf32>
    %310 = arith.addf %308, %309 : vector<8x128xf32>
    %cst_254 = arith.constant dense<0.000000e+00> : vector<128xf32>
    %311 = vector.multi_reduction <add>, %310, %cst_254 [0] : vector<8x128xf32> to vector<128xf32>
    %312 = vector.shape_cast %311 : vector<128xf32> to vector<1x128xf32>
    %cst_255 = arith.constant 1.250000e-01 : f32
    %313 = vector.broadcast %cst_255 : f32 to vector<1x128xf32>
    %314 = arith.mulf %312, %313 : vector<1x128xf32>
    %cst_256 = arith.constant 7.07106781E-4 : f32
    %315 = vector.broadcast %cst_256 : f32 to vector<1x128xf32>
    %316 = arith.addf %314, %315 : vector<1x128xf32>
    %cst_257 = arith.constant 7.07106781E-4 : f32
    %317 = vector.broadcast %cst_257 : f32 to vector<1x128xf32>
    %c0_258 = arith.constant 0 : index
    %c0_259 = arith.constant 0 : index
    %c3_260 = arith.constant 3 : index
    %c0_261 = arith.constant 0 : index
    %c0_262 = arith.constant 0 : index
    %318 = vector.load %arg3[%c0_258, %c0_259, %c3_260, %c0_261, %c0_262] : memref<1x2x4x8x128xf32, #tpu.memory_space<vmem>>, vector<1x1x1x8x128xf32>
    %319 = vector.shape_cast %318 : vector<1x1x1x8x128xf32> to vector<8x128xf32>
    %c0_263 = arith.constant 0 : index
    %c1_264 = arith.constant 1 : index
    %c3_265 = arith.constant 3 : index
    %c0_266 = arith.constant 0 : index
    %c0_267 = arith.constant 0 : index
    %320 = vector.load %arg3[%c0_263, %c1_264, %c3_265, %c0_266, %c0_267] : memref<1x2x4x8x128xf32, #tpu.memory_space<vmem>>, vector<1x1x1x8x128xf32>
    %321 = vector.shape_cast %320 : vector<1x1x1x8x128xf32> to vector<8x128xf32>
    %322 = arith.mulf %305, %319 : vector<8x128xf32>
    %323 = arith.mulf %307, %321 : vector<8x128xf32>
    %324 = arith.addf %322, %323 : vector<8x128xf32>
    %cst_268 = arith.constant dense<0.000000e+00> : vector<128xf32>
    %325 = vector.multi_reduction <add>, %324, %cst_268 [0] : vector<8x128xf32> to vector<128xf32>
    %326 = vector.shape_cast %325 : vector<128xf32> to vector<1x128xf32>
    %cst_269 = arith.constant 1.250000e-01 : f32
    %327 = vector.broadcast %cst_269 : f32 to vector<1x128xf32>
    %328 = arith.mulf %326, %327 : vector<1x128xf32>
    %329 = arith.mulf %307, %319 : vector<8x128xf32>
    %330 = arith.mulf %305, %321 : vector<8x128xf32>
    %331 = arith.subf %329, %330 : vector<8x128xf32>
    %cst_270 = arith.constant dense<0.000000e+00> : vector<128xf32>
    %332 = vector.multi_reduction <add>, %331, %cst_270 [0] : vector<8x128xf32> to vector<128xf32>
    %333 = vector.shape_cast %332 : vector<128xf32> to vector<1x128xf32>
    %cst_271 = arith.constant 1.250000e-01 : f32
    %334 = vector.broadcast %cst_271 : f32 to vector<1x128xf32>
    %335 = arith.mulf %333, %334 : vector<1x128xf32>
    %cst_272 = arith.constant 0.000000e+00 : f32
    %336 = vector.broadcast %cst_272 : f32 to vector<1x128xf32>
    %337 = arith.subf %336, %335 : vector<1x128xf32>
    %c0_273 = arith.constant 0 : index
    %c0_274 = arith.constant 0 : index
    %c3_275 = arith.constant 3 : index
    %c0_276 = arith.constant 0 : index
    %c0_277 = arith.constant 0 : index
    %338 = vector.load %arg3[%c0_273, %c0_274, %c3_275, %c0_276, %c0_277] : memref<1x2x4x8x128xf32, #tpu.memory_space<vmem>>, vector<1x1x1x8x128xf32>
    %339 = vector.shape_cast %338 : vector<1x1x1x8x128xf32> to vector<8x128xf32>
    %c0_278 = arith.constant 0 : index
    %c1_279 = arith.constant 1 : index
    %c3_280 = arith.constant 3 : index
    %c0_281 = arith.constant 0 : index
    %c0_282 = arith.constant 0 : index
    %340 = vector.load %arg3[%c0_278, %c1_279, %c3_280, %c0_281, %c0_282] : memref<1x2x4x8x128xf32, #tpu.memory_space<vmem>>, vector<1x1x1x8x128xf32>
    %341 = vector.shape_cast %340 : vector<1x1x1x8x128xf32> to vector<8x128xf32>
    %342 = arith.mulf %339, %339 : vector<8x128xf32>
    %343 = arith.mulf %341, %341 : vector<8x128xf32>
    %344 = arith.addf %342, %343 : vector<8x128xf32>
    %cst_283 = arith.constant dense<0.000000e+00> : vector<128xf32>
    %345 = vector.multi_reduction <add>, %344, %cst_283 [0] : vector<8x128xf32> to vector<128xf32>
    %346 = vector.shape_cast %345 : vector<128xf32> to vector<1x128xf32>
    %cst_284 = arith.constant 1.250000e-01 : f32
    %347 = vector.broadcast %cst_284 : f32 to vector<1x128xf32>
    %348 = arith.mulf %346, %347 : vector<1x128xf32>
    %cst_285 = arith.constant 7.07106781E-4 : f32
    %349 = vector.broadcast %cst_285 : f32 to vector<1x128xf32>
    %350 = arith.addf %348, %349 : vector<1x128xf32>
    %cst_286 = arith.constant 7.07106781E-4 : f32
    %351 = vector.broadcast %cst_286 : f32 to vector<1x128xf32>
    %352 = tpu.concatenate %188, %200, %220, %240, %12, %24, %44, %64 in 0 : vector<1x128xf32>, vector<1x128xf32>, vector<1x128xf32>, vector<1x128xf32>, vector<1x128xf32>, vector<1x128xf32>, vector<1x128xf32>, vector<1x128xf32> -> vector<8x128xf32>
    %353 = tpu.concatenate %189, %207, %227, %247, %13, %31, %51, %71 in 0 : vector<1x128xf32>, vector<1x128xf32>, vector<1x128xf32>, vector<1x128xf32>, vector<1x128xf32>, vector<1x128xf32>, vector<1x128xf32>, vector<1x128xf32> -> vector<8x128xf32>
    %354 = tpu.concatenate %200, %262, %274, %294, %24, %86, %98, %118 in 0 : vector<1x128xf32>, vector<1x128xf32>, vector<1x128xf32>, vector<1x128xf32>, vector<1x128xf32>, vector<1x128xf32>, vector<1x128xf32>, vector<1x128xf32> -> vector<8x128xf32>
    %355 = tpu.concatenate %209, %263, %281, %301, %33, %87, %105, %125 in 0 : vector<1x128xf32>, vector<1x128xf32>, vector<1x128xf32>, vector<1x128xf32>, vector<1x128xf32>, vector<1x128xf32>, vector<1x128xf32>, vector<1x128xf32> -> vector<8x128xf32>
    %356 = tpu.concatenate %220, %274, %316, %328, %44, %98, %140, %152 in 0 : vector<1x128xf32>, vector<1x128xf32>, vector<1x128xf32>, vector<1x128xf32>, vector<1x128xf32>, vector<1x128xf32>, vector<1x128xf32>, vector<1x128xf32> -> vector<8x128xf32>
    %357 = tpu.concatenate %229, %283, %317, %335, %53, %107, %141, %159 in 0 : vector<1x128xf32>, vector<1x128xf32>, vector<1x128xf32>, vector<1x128xf32>, vector<1x128xf32>, vector<1x128xf32>, vector<1x128xf32>, vector<1x128xf32> -> vector<8x128xf32>
    %358 = tpu.concatenate %240, %294, %328, %350, %64, %118, %152, %174 in 0 : vector<1x128xf32>, vector<1x128xf32>, vector<1x128xf32>, vector<1x128xf32>, vector<1x128xf32>, vector<1x128xf32>, vector<1x128xf32>, vector<1x128xf32> -> vector<8x128xf32>
    %359 = tpu.concatenate %249, %303, %337, %351, %73, %127, %161, %175 in 0 : vector<1x128xf32>, vector<1x128xf32>, vector<1x128xf32>, vector<1x128xf32>, vector<1x128xf32>, vector<1x128xf32>, vector<1x128xf32>, vector<1x128xf32> -> vector<8x128xf32>
    %360 = vector.extract_strided_slice %352 {offsets = [0, 0], sizes = [1, 128], strides = [1, 1]} : vector<8x128xf32> to vector<1x128xf32>
    %361 = vector.extract_strided_slice %353 {offsets = [0, 0], sizes = [1, 128], strides = [1, 1]} : vector<8x128xf32> to vector<1x128xf32>
    %362 = arith.mulf %360, %360 : vector<1x128xf32>
    %363 = arith.mulf %361, %361 : vector<1x128xf32>
    %364 = arith.addf %362, %363 : vector<1x128xf32>
    %365 = tpu.reciprocal %364 {approx = true} : vector<1x128xf32> -> vector<1x128xf32>
    %366 = arith.mulf %364, %365 : vector<1x128xf32>
    %cst_287 = arith.constant 2.000000e+00 : f32
    %367 = vector.broadcast %cst_287 : f32 to vector<1x128xf32>
    %368 = arith.subf %367, %366 : vector<1x128xf32>
    %369 = arith.mulf %365, %368 : vector<1x128xf32>
    %370 = arith.mulf %360, %369 : vector<1x128xf32>
    %cst_288 = arith.constant 0.000000e+00 : f32
    %371 = vector.broadcast %cst_288 : f32 to vector<1x128xf32>
    %372 = arith.subf %371, %361 : vector<1x128xf32>
    %373 = arith.mulf %372, %369 : vector<1x128xf32>
    %374 = vector.shape_cast %370 : vector<1x128xf32> to vector<1x128xf32>
    %375 = vector.broadcast %374 : vector<1x128xf32> to vector<8x128xf32>
    %376 = vector.shape_cast %373 : vector<1x128xf32> to vector<1x128xf32>
    %377 = vector.broadcast %376 : vector<1x128xf32> to vector<8x128xf32>
    %378 = arith.mulf %375, %352 : vector<8x128xf32>
    %379 = arith.mulf %377, %353 : vector<8x128xf32>
    %380 = arith.subf %378, %379 : vector<8x128xf32>
    %381 = arith.mulf %375, %353 : vector<8x128xf32>
    %382 = arith.mulf %377, %352 : vector<8x128xf32>
    %383 = arith.addf %381, %382 : vector<8x128xf32>
    %384 = vector.extract_strided_slice %354 {offsets = [0, 0], sizes = [1, 128], strides = [1, 1]} : vector<8x128xf32> to vector<1x128xf32>
    %385 = vector.shape_cast %384 : vector<1x128xf32> to vector<1x128xf32>
    %386 = vector.broadcast %385 : vector<1x128xf32> to vector<8x128xf32>
    %387 = vector.extract_strided_slice %355 {offsets = [0, 0], sizes = [1, 128], strides = [1, 1]} : vector<8x128xf32> to vector<1x128xf32>
    %388 = vector.shape_cast %387 : vector<1x128xf32> to vector<1x128xf32>
    %389 = vector.broadcast %388 : vector<1x128xf32> to vector<8x128xf32>
    %390 = arith.mulf %386, %380 : vector<8x128xf32>
    %391 = arith.mulf %389, %383 : vector<8x128xf32>
    %392 = arith.subf %390, %391 : vector<8x128xf32>
    %393 = arith.subf %354, %392 : vector<8x128xf32>
    %394 = arith.mulf %386, %383 : vector<8x128xf32>
    %395 = arith.mulf %389, %380 : vector<8x128xf32>
    %396 = arith.addf %394, %395 : vector<8x128xf32>
    %397 = arith.subf %355, %396 : vector<8x128xf32>
    %398 = vector.extract_strided_slice %356 {offsets = [0, 0], sizes = [1, 128], strides = [1, 1]} : vector<8x128xf32> to vector<1x128xf32>
    %399 = vector.shape_cast %398 : vector<1x128xf32> to vector<1x128xf32>
    %400 = vector.broadcast %399 : vector<1x128xf32> to vector<8x128xf32>
    %401 = vector.extract_strided_slice %357 {offsets = [0, 0], sizes = [1, 128], strides = [1, 1]} : vector<8x128xf32> to vector<1x128xf32>
    %402 = vector.shape_cast %401 : vector<1x128xf32> to vector<1x128xf32>
    %403 = vector.broadcast %402 : vector<1x128xf32> to vector<8x128xf32>
    %404 = arith.mulf %400, %380 : vector<8x128xf32>
    %405 = arith.mulf %403, %383 : vector<8x128xf32>
    %406 = arith.subf %404, %405 : vector<8x128xf32>
    %407 = arith.subf %356, %406 : vector<8x128xf32>
    %408 = arith.mulf %400, %383 : vector<8x128xf32>
    %409 = arith.mulf %403, %380 : vector<8x128xf32>
    %410 = arith.addf %408, %409 : vector<8x128xf32>
    %411 = arith.subf %357, %410 : vector<8x128xf32>
    %412 = vector.extract_strided_slice %358 {offsets = [0, 0], sizes = [1, 128], strides = [1, 1]} : vector<8x128xf32> to vector<1x128xf32>
    %413 = vector.shape_cast %412 : vector<1x128xf32> to vector<1x128xf32>
    %414 = vector.broadcast %413 : vector<1x128xf32> to vector<8x128xf32>
    %415 = vector.extract_strided_slice %359 {offsets = [0, 0], sizes = [1, 128], strides = [1, 1]} : vector<8x128xf32> to vector<1x128xf32>
    %416 = vector.shape_cast %415 : vector<1x128xf32> to vector<1x128xf32>
    %417 = vector.broadcast %416 : vector<1x128xf32> to vector<8x128xf32>
    %418 = arith.mulf %414, %380 : vector<8x128xf32>
    %419 = arith.mulf %417, %383 : vector<8x128xf32>
    %420 = arith.subf %418, %419 : vector<8x128xf32>
    %421 = arith.subf %358, %420 : vector<8x128xf32>
    %422 = arith.mulf %414, %383 : vector<8x128xf32>
    %423 = arith.mulf %417, %380 : vector<8x128xf32>
    %424 = arith.addf %422, %423 : vector<8x128xf32>
    %425 = arith.subf %359, %424 : vector<8x128xf32>
    %426 = vector.extract_strided_slice %393 {offsets = [1, 0], sizes = [1, 128], strides = [1, 1]} : vector<8x128xf32> to vector<1x128xf32>
    %427 = vector.extract_strided_slice %397 {offsets = [1, 0], sizes = [1, 128], strides = [1, 1]} : vector<8x128xf32> to vector<1x128xf32>
    %428 = arith.mulf %426, %426 : vector<1x128xf32>
    %429 = arith.mulf %427, %427 : vector<1x128xf32>
    %430 = arith.addf %428, %429 : vector<1x128xf32>
    %431 = tpu.reciprocal %430 {approx = true} : vector<1x128xf32> -> vector<1x128xf32>
    %432 = arith.mulf %430, %431 : vector<1x128xf32>
    %cst_289 = arith.constant 2.000000e+00 : f32
    %433 = vector.broadcast %cst_289 : f32 to vector<1x128xf32>
    %434 = arith.subf %433, %432 : vector<1x128xf32>
    %435 = arith.mulf %431, %434 : vector<1x128xf32>
    %436 = arith.mulf %426, %435 : vector<1x128xf32>
    %cst_290 = arith.constant 0.000000e+00 : f32
    %437 = vector.broadcast %cst_290 : f32 to vector<1x128xf32>
    %438 = arith.subf %437, %427 : vector<1x128xf32>
    %439 = arith.mulf %438, %435 : vector<1x128xf32>
    %440 = vector.shape_cast %436 : vector<1x128xf32> to vector<1x128xf32>
    %441 = vector.broadcast %440 : vector<1x128xf32> to vector<8x128xf32>
    %442 = vector.shape_cast %439 : vector<1x128xf32> to vector<1x128xf32>
    %443 = vector.broadcast %442 : vector<1x128xf32> to vector<8x128xf32>
    %444 = arith.mulf %441, %393 : vector<8x128xf32>
    %445 = arith.mulf %443, %397 : vector<8x128xf32>
    %446 = arith.subf %444, %445 : vector<8x128xf32>
    %447 = arith.mulf %441, %397 : vector<8x128xf32>
    %448 = arith.mulf %443, %393 : vector<8x128xf32>
    %449 = arith.addf %447, %448 : vector<8x128xf32>
    %450 = vector.extract_strided_slice %380 {offsets = [1, 0], sizes = [1, 128], strides = [1, 1]} : vector<8x128xf32> to vector<1x128xf32>
    %451 = vector.shape_cast %450 : vector<1x128xf32> to vector<1x128xf32>
    %452 = vector.broadcast %451 : vector<1x128xf32> to vector<8x128xf32>
    %453 = vector.extract_strided_slice %383 {offsets = [1, 0], sizes = [1, 128], strides = [1, 1]} : vector<8x128xf32> to vector<1x128xf32>
    %454 = vector.shape_cast %453 : vector<1x128xf32> to vector<1x128xf32>
    %455 = vector.broadcast %454 : vector<1x128xf32> to vector<8x128xf32>
    %456 = arith.mulf %452, %446 : vector<8x128xf32>
    %457 = arith.mulf %455, %449 : vector<8x128xf32>
    %458 = arith.subf %456, %457 : vector<8x128xf32>
    %459 = arith.subf %380, %458 : vector<8x128xf32>
    %460 = arith.mulf %452, %449 : vector<8x128xf32>
    %461 = arith.mulf %455, %446 : vector<8x128xf32>
    %462 = arith.addf %460, %461 : vector<8x128xf32>
    %463 = arith.subf %383, %462 : vector<8x128xf32>
    %464 = vector.extract_strided_slice %407 {offsets = [1, 0], sizes = [1, 128], strides = [1, 1]} : vector<8x128xf32> to vector<1x128xf32>
    %465 = vector.shape_cast %464 : vector<1x128xf32> to vector<1x128xf32>
    %466 = vector.broadcast %465 : vector<1x128xf32> to vector<8x128xf32>
    %467 = vector.extract_strided_slice %411 {offsets = [1, 0], sizes = [1, 128], strides = [1, 1]} : vector<8x128xf32> to vector<1x128xf32>
    %468 = vector.shape_cast %467 : vector<1x128xf32> to vector<1x128xf32>
    %469 = vector.broadcast %468 : vector<1x128xf32> to vector<8x128xf32>
    %470 = arith.mulf %466, %446 : vector<8x128xf32>
    %471 = arith.mulf %469, %449 : vector<8x128xf32>
    %472 = arith.subf %470, %471 : vector<8x128xf32>
    %473 = arith.subf %407, %472 : vector<8x128xf32>
    %474 = arith.mulf %466, %449 : vector<8x128xf32>
    %475 = arith.mulf %469, %446 : vector<8x128xf32>
    %476 = arith.addf %474, %475 : vector<8x128xf32>
    %477 = arith.subf %411, %476 : vector<8x128xf32>
    %478 = vector.extract_strided_slice %421 {offsets = [1, 0], sizes = [1, 128], strides = [1, 1]} : vector<8x128xf32> to vector<1x128xf32>
    %479 = vector.shape_cast %478 : vector<1x128xf32> to vector<1x128xf32>
    %480 = vector.broadcast %479 : vector<1x128xf32> to vector<8x128xf32>
    %481 = vector.extract_strided_slice %425 {offsets = [1, 0], sizes = [1, 128], strides = [1, 1]} : vector<8x128xf32> to vector<1x128xf32>
    %482 = vector.shape_cast %481 : vector<1x128xf32> to vector<1x128xf32>
    %483 = vector.broadcast %482 : vector<1x128xf32> to vector<8x128xf32>
    %484 = arith.mulf %480, %446 : vector<8x128xf32>
    %485 = arith.mulf %483, %449 : vector<8x128xf32>
    %486 = arith.subf %484, %485 : vector<8x128xf32>
    %487 = arith.subf %421, %486 : vector<8x128xf32>
    %488 = arith.mulf %480, %449 : vector<8x128xf32>
    %489 = arith.mulf %483, %446 : vector<8x128xf32>
    %490 = arith.addf %488, %489 : vector<8x128xf32>
    %491 = arith.subf %425, %490 : vector<8x128xf32>
    %492 = vector.extract_strided_slice %473 {offsets = [2, 0], sizes = [1, 128], strides = [1, 1]} : vector<8x128xf32> to vector<1x128xf32>
    %493 = vector.extract_strided_slice %477 {offsets = [2, 0], sizes = [1, 128], strides = [1, 1]} : vector<8x128xf32> to vector<1x128xf32>
    %494 = arith.mulf %492, %492 : vector<1x128xf32>
    %495 = arith.mulf %493, %493 : vector<1x128xf32>
    %496 = arith.addf %494, %495 : vector<1x128xf32>
    %497 = tpu.reciprocal %496 {approx = true} : vector<1x128xf32> -> vector<1x128xf32>
    %498 = arith.mulf %496, %497 : vector<1x128xf32>
    %cst_291 = arith.constant 2.000000e+00 : f32
    %499 = vector.broadcast %cst_291 : f32 to vector<1x128xf32>
    %500 = arith.subf %499, %498 : vector<1x128xf32>
    %501 = arith.mulf %497, %500 : vector<1x128xf32>
    %502 = arith.mulf %492, %501 : vector<1x128xf32>
    %cst_292 = arith.constant 0.000000e+00 : f32
    %503 = vector.broadcast %cst_292 : f32 to vector<1x128xf32>
    %504 = arith.subf %503, %493 : vector<1x128xf32>
    %505 = arith.mulf %504, %501 : vector<1x128xf32>
    %506 = vector.shape_cast %502 : vector<1x128xf32> to vector<1x128xf32>
    %507 = vector.broadcast %506 : vector<1x128xf32> to vector<8x128xf32>
    %508 = vector.shape_cast %505 : vector<1x128xf32> to vector<1x128xf32>
    %509 = vector.broadcast %508 : vector<1x128xf32> to vector<8x128xf32>
    %510 = arith.mulf %507, %473 : vector<8x128xf32>
    %511 = arith.mulf %509, %477 : vector<8x128xf32>
    %512 = arith.subf %510, %511 : vector<8x128xf32>
    %513 = arith.mulf %507, %477 : vector<8x128xf32>
    %514 = arith.mulf %509, %473 : vector<8x128xf32>
    %515 = arith.addf %513, %514 : vector<8x128xf32>
    %516 = vector.extract_strided_slice %459 {offsets = [2, 0], sizes = [1, 128], strides = [1, 1]} : vector<8x128xf32> to vector<1x128xf32>
    %517 = vector.shape_cast %516 : vector<1x128xf32> to vector<1x128xf32>
    %518 = vector.broadcast %517 : vector<1x128xf32> to vector<8x128xf32>
    %519 = vector.extract_strided_slice %463 {offsets = [2, 0], sizes = [1, 128], strides = [1, 1]} : vector<8x128xf32> to vector<1x128xf32>
    %520 = vector.shape_cast %519 : vector<1x128xf32> to vector<1x128xf32>
    %521 = vector.broadcast %520 : vector<1x128xf32> to vector<8x128xf32>
    %522 = arith.mulf %518, %512 : vector<8x128xf32>
    %523 = arith.mulf %521, %515 : vector<8x128xf32>
    %524 = arith.subf %522, %523 : vector<8x128xf32>
    %525 = arith.subf %459, %524 : vector<8x128xf32>
    %526 = arith.mulf %518, %515 : vector<8x128xf32>
    %527 = arith.mulf %521, %512 : vector<8x128xf32>
    %528 = arith.addf %526, %527 : vector<8x128xf32>
    %529 = arith.subf %463, %528 : vector<8x128xf32>
    %530 = vector.extract_strided_slice %446 {offsets = [2, 0], sizes = [1, 128], strides = [1, 1]} : vector<8x128xf32> to vector<1x128xf32>
    %531 = vector.shape_cast %530 : vector<1x128xf32> to vector<1x128xf32>
    %532 = vector.broadcast %531 : vector<1x128xf32> to vector<8x128xf32>
    %533 = vector.extract_strided_slice %449 {offsets = [2, 0], sizes = [1, 128], strides = [1, 1]} : vector<8x128xf32> to vector<1x128xf32>
    %534 = vector.shape_cast %533 : vector<1x128xf32> to vector<1x128xf32>
    %535 = vector.broadcast %534 : vector<1x128xf32> to vector<8x128xf32>
    %536 = arith.mulf %532, %512 : vector<8x128xf32>
    %537 = arith.mulf %535, %515 : vector<8x128xf32>
    %538 = arith.subf %536, %537 : vector<8x128xf32>
    %539 = arith.subf %446, %538 : vector<8x128xf32>
    %540 = arith.mulf %532, %515 : vector<8x128xf32>
    %541 = arith.mulf %535, %512 : vector<8x128xf32>
    %542 = arith.addf %540, %541 : vector<8x128xf32>
    %543 = arith.subf %449, %542 : vector<8x128xf32>
    %544 = vector.extract_strided_slice %487 {offsets = [2, 0], sizes = [1, 128], strides = [1, 1]} : vector<8x128xf32> to vector<1x128xf32>
    %545 = vector.shape_cast %544 : vector<1x128xf32> to vector<1x128xf32>
    %546 = vector.broadcast %545 : vector<1x128xf32> to vector<8x128xf32>
    %547 = vector.extract_strided_slice %491 {offsets = [2, 0], sizes = [1, 128], strides = [1, 1]} : vector<8x128xf32> to vector<1x128xf32>
    %548 = vector.shape_cast %547 : vector<1x128xf32> to vector<1x128xf32>
    %549 = vector.broadcast %548 : vector<1x128xf32> to vector<8x128xf32>
    %550 = arith.mulf %546, %512 : vector<8x128xf32>
    %551 = arith.mulf %549, %515 : vector<8x128xf32>
    %552 = arith.subf %550, %551 : vector<8x128xf32>
    %553 = arith.subf %487, %552 : vector<8x128xf32>
    %554 = arith.mulf %546, %515 : vector<8x128xf32>
    %555 = arith.mulf %549, %512 : vector<8x128xf32>
    %556 = arith.addf %554, %555 : vector<8x128xf32>
    %557 = arith.subf %491, %556 : vector<8x128xf32>
    %558 = vector.extract_strided_slice %553 {offsets = [3, 0], sizes = [1, 128], strides = [1, 1]} : vector<8x128xf32> to vector<1x128xf32>
    %559 = vector.extract_strided_slice %557 {offsets = [3, 0], sizes = [1, 128], strides = [1, 1]} : vector<8x128xf32> to vector<1x128xf32>
    %560 = arith.mulf %558, %558 : vector<1x128xf32>
    %561 = arith.mulf %559, %559 : vector<1x128xf32>
    %562 = arith.addf %560, %561 : vector<1x128xf32>
    %563 = tpu.reciprocal %562 {approx = true} : vector<1x128xf32> -> vector<1x128xf32>
    %564 = arith.mulf %562, %563 : vector<1x128xf32>
    %cst_293 = arith.constant 2.000000e+00 : f32
    %565 = vector.broadcast %cst_293 : f32 to vector<1x128xf32>
    %566 = arith.subf %565, %564 : vector<1x128xf32>
    %567 = arith.mulf %563, %566 : vector<1x128xf32>
    %568 = arith.mulf %558, %567 : vector<1x128xf32>
    %cst_294 = arith.constant 0.000000e+00 : f32
    %569 = vector.broadcast %cst_294 : f32 to vector<1x128xf32>
    %570 = arith.subf %569, %559 : vector<1x128xf32>
    %571 = arith.mulf %570, %567 : vector<1x128xf32>
    %572 = vector.shape_cast %568 : vector<1x128xf32> to vector<1x128xf32>
    %573 = vector.broadcast %572 : vector<1x128xf32> to vector<8x128xf32>
    %574 = vector.shape_cast %571 : vector<1x128xf32> to vector<1x128xf32>
    %575 = vector.broadcast %574 : vector<1x128xf32> to vector<8x128xf32>
    %576 = arith.mulf %573, %553 : vector<8x128xf32>
    %577 = arith.mulf %575, %557 : vector<8x128xf32>
    %578 = arith.subf %576, %577 : vector<8x128xf32>
    %579 = arith.mulf %573, %557 : vector<8x128xf32>
    %580 = arith.mulf %575, %553 : vector<8x128xf32>
    %581 = arith.addf %579, %580 : vector<8x128xf32>
    %582 = vector.extract_strided_slice %525 {offsets = [3, 0], sizes = [1, 128], strides = [1, 1]} : vector<8x128xf32> to vector<1x128xf32>
    %583 = vector.shape_cast %582 : vector<1x128xf32> to vector<1x128xf32>
    %584 = vector.broadcast %583 : vector<1x128xf32> to vector<8x128xf32>
    %585 = vector.extract_strided_slice %529 {offsets = [3, 0], sizes = [1, 128], strides = [1, 1]} : vector<8x128xf32> to vector<1x128xf32>
    %586 = vector.shape_cast %585 : vector<1x128xf32> to vector<1x128xf32>
    %587 = vector.broadcast %586 : vector<1x128xf32> to vector<8x128xf32>
    %588 = arith.mulf %584, %578 : vector<8x128xf32>
    %589 = arith.mulf %587, %581 : vector<8x128xf32>
    %590 = arith.subf %588, %589 : vector<8x128xf32>
    %591 = arith.subf %525, %590 : vector<8x128xf32>
    %592 = arith.mulf %584, %581 : vector<8x128xf32>
    %593 = arith.mulf %587, %578 : vector<8x128xf32>
    %594 = arith.addf %592, %593 : vector<8x128xf32>
    %595 = arith.subf %529, %594 : vector<8x128xf32>
    %596 = vector.extract_strided_slice %539 {offsets = [3, 0], sizes = [1, 128], strides = [1, 1]} : vector<8x128xf32> to vector<1x128xf32>
    %597 = vector.shape_cast %596 : vector<1x128xf32> to vector<1x128xf32>
    %598 = vector.broadcast %597 : vector<1x128xf32> to vector<8x128xf32>
    %599 = vector.extract_strided_slice %543 {offsets = [3, 0], sizes = [1, 128], strides = [1, 1]} : vector<8x128xf32> to vector<1x128xf32>
    %600 = vector.shape_cast %599 : vector<1x128xf32> to vector<1x128xf32>
    %601 = vector.broadcast %600 : vector<1x128xf32> to vector<8x128xf32>
    %602 = arith.mulf %598, %578 : vector<8x128xf32>
    %603 = arith.mulf %601, %581 : vector<8x128xf32>
    %604 = arith.subf %602, %603 : vector<8x128xf32>
    %605 = arith.subf %539, %604 : vector<8x128xf32>
    %606 = arith.mulf %598, %581 : vector<8x128xf32>
    %607 = arith.mulf %601, %578 : vector<8x128xf32>
    %608 = arith.addf %606, %607 : vector<8x128xf32>
    %609 = arith.subf %543, %608 : vector<8x128xf32>
    %610 = vector.extract_strided_slice %512 {offsets = [3, 0], sizes = [1, 128], strides = [1, 1]} : vector<8x128xf32> to vector<1x128xf32>
    %611 = vector.shape_cast %610 : vector<1x128xf32> to vector<1x128xf32>
    %612 = vector.broadcast %611 : vector<1x128xf32> to vector<8x128xf32>
    %613 = vector.extract_strided_slice %515 {offsets = [3, 0], sizes = [1, 128], strides = [1, 1]} : vector<8x128xf32> to vector<1x128xf32>
    %614 = vector.shape_cast %613 : vector<1x128xf32> to vector<1x128xf32>
    %615 = vector.broadcast %614 : vector<1x128xf32> to vector<8x128xf32>
    %616 = arith.mulf %612, %578 : vector<8x128xf32>
    %617 = arith.mulf %615, %581 : vector<8x128xf32>
    %618 = arith.subf %616, %617 : vector<8x128xf32>
    %619 = arith.subf %512, %618 : vector<8x128xf32>
    %620 = arith.mulf %612, %581 : vector<8x128xf32>
    %621 = arith.mulf %615, %578 : vector<8x128xf32>
    %622 = arith.addf %620, %621 : vector<8x128xf32>
    %623 = arith.subf %515, %622 : vector<8x128xf32>
    %624 = vector.extract_strided_slice %591 {offsets = [4, 0], sizes = [1, 128], strides = [1, 1]} : vector<8x128xf32> to vector<1x128xf32>
    %625 = vector.extract_strided_slice %595 {offsets = [4, 0], sizes = [1, 128], strides = [1, 1]} : vector<8x128xf32> to vector<1x128xf32>
    %626 = vector.extract_strided_slice %605 {offsets = [5, 0], sizes = [1, 128], strides = [1, 1]} : vector<8x128xf32> to vector<1x128xf32>
    %627 = arith.addf %624, %626 : vector<1x128xf32>
    %628 = vector.extract_strided_slice %609 {offsets = [5, 0], sizes = [1, 128], strides = [1, 1]} : vector<8x128xf32> to vector<1x128xf32>
    %629 = arith.addf %625, %628 : vector<1x128xf32>
    %630 = vector.extract_strided_slice %619 {offsets = [6, 0], sizes = [1, 128], strides = [1, 1]} : vector<8x128xf32> to vector<1x128xf32>
    %631 = arith.addf %627, %630 : vector<1x128xf32>
    %632 = vector.extract_strided_slice %623 {offsets = [6, 0], sizes = [1, 128], strides = [1, 1]} : vector<8x128xf32> to vector<1x128xf32>
    %633 = arith.addf %629, %632 : vector<1x128xf32>
    %634 = vector.extract_strided_slice %578 {offsets = [7, 0], sizes = [1, 128], strides = [1, 1]} : vector<8x128xf32> to vector<1x128xf32>
    %635 = arith.addf %631, %634 : vector<1x128xf32>
    %636 = vector.extract_strided_slice %581 {offsets = [7, 0], sizes = [1, 128], strides = [1, 1]} : vector<8x128xf32> to vector<1x128xf32>
    %637 = arith.addf %633, %636 : vector<1x128xf32>
    %cst_295 = arith.constant 2.82842708 : f32
    %638 = vector.broadcast %cst_295 : f32 to vector<1x128xf32>
    %639 = arith.subf %635, %638 : vector<1x128xf32>
    %cst_296 = arith.constant 2.82842708 : f32
    %640 = vector.broadcast %cst_296 : f32 to vector<1x128xf32>
    %641 = arith.subf %637, %640 : vector<1x128xf32>
    %642 = arith.mulf %639, %639 : vector<1x128xf32>
    %643 = arith.mulf %641, %641 : vector<1x128xf32>
    %644 = arith.addf %642, %643 : vector<1x128xf32>
    %645 = tpu.reciprocal %644 {approx = true} : vector<1x128xf32> -> vector<1x128xf32>
    %646 = arith.mulf %644, %645 : vector<1x128xf32>
    %cst_297 = arith.constant 2.000000e+00 : f32
    %647 = vector.broadcast %cst_297 : f32 to vector<1x128xf32>
    %648 = arith.subf %647, %646 : vector<1x128xf32>
    %649 = arith.mulf %645, %648 : vector<1x128xf32>
    %650 = arith.mulf %639, %649 : vector<1x128xf32>
    %cst_298 = arith.constant 0.000000e+00 : f32
    %651 = vector.broadcast %cst_298 : f32 to vector<1x128xf32>
    %652 = arith.subf %651, %641 : vector<1x128xf32>
    %653 = arith.mulf %652, %649 : vector<1x128xf32>
    %654 = vector.extract_strided_slice %591 {offsets = [4, 0], sizes = [1, 128], strides = [1, 1]} : vector<8x128xf32> to vector<1x128xf32>
    %655 = vector.extract_strided_slice %595 {offsets = [4, 0], sizes = [1, 128], strides = [1, 1]} : vector<8x128xf32> to vector<1x128xf32>
    %cst_299 = arith.constant 0.707106769 : f32
    %656 = vector.broadcast %cst_299 : f32 to vector<1x128xf32>
    %657 = arith.subf %654, %656 : vector<1x128xf32>
    %cst_300 = arith.constant 0.707106769 : f32
    %658 = vector.broadcast %cst_300 : f32 to vector<1x128xf32>
    %659 = arith.subf %655, %658 : vector<1x128xf32>
    %660 = arith.mulf %650, %657 : vector<1x128xf32>
    %661 = arith.mulf %653, %659 : vector<1x128xf32>
    %662 = arith.subf %660, %661 : vector<1x128xf32>
    %663 = arith.mulf %650, %659 : vector<1x128xf32>
    %664 = arith.mulf %653, %657 : vector<1x128xf32>
    %665 = arith.addf %663, %664 : vector<1x128xf32>
    %c0_301 = arith.constant 0 : index
    %c0_302 = arith.constant 0 : index
    %c0_303 = arith.constant 0 : index
    %c0_304 = arith.constant 0 : index
    %c0_305 = arith.constant 0 : index
    %666 = vector.load %arg2[%c0_301, %c0_302, %c0_303, %c0_304, %c0_305] : memref<1x2x4x8x128xf32, #tpu.memory_space<vmem>>, vector<1x1x1x8x128xf32>
    %667 = vector.shape_cast %666 : vector<1x1x1x8x128xf32> to vector<8x128xf32>
    %c0_306 = arith.constant 0 : index
    %c1_307 = arith.constant 1 : index
    %c0_308 = arith.constant 0 : index
    %c0_309 = arith.constant 0 : index
    %c0_310 = arith.constant 0 : index
    %668 = vector.load %arg2[%c0_306, %c1_307, %c0_308, %c0_309, %c0_310] : memref<1x2x4x8x128xf32, #tpu.memory_space<vmem>>, vector<1x1x1x8x128xf32>
    %669 = vector.shape_cast %668 : vector<1x1x1x8x128xf32> to vector<8x128xf32>
    %670 = vector.shape_cast %662 : vector<1x128xf32> to vector<1x128xf32>
    %671 = vector.broadcast %670 : vector<1x128xf32> to vector<8x128xf32>
    %672 = vector.shape_cast %665 : vector<1x128xf32> to vector<1x128xf32>
    %673 = vector.broadcast %672 : vector<1x128xf32> to vector<8x128xf32>
    %674 = arith.mulf %671, %667 : vector<8x128xf32>
    %675 = arith.mulf %673, %669 : vector<8x128xf32>
    %676 = arith.addf %674, %675 : vector<8x128xf32>
    %677 = arith.mulf %671, %669 : vector<8x128xf32>
    %678 = arith.mulf %673, %667 : vector<8x128xf32>
    %679 = arith.subf %677, %678 : vector<8x128xf32>
    %680 = vector.extract_strided_slice %605 {offsets = [4, 0], sizes = [1, 128], strides = [1, 1]} : vector<8x128xf32> to vector<1x128xf32>
    %681 = vector.extract_strided_slice %609 {offsets = [4, 0], sizes = [1, 128], strides = [1, 1]} : vector<8x128xf32> to vector<1x128xf32>
    %682 = arith.mulf %650, %680 : vector<1x128xf32>
    %683 = arith.mulf %653, %681 : vector<1x128xf32>
    %684 = arith.subf %682, %683 : vector<1x128xf32>
    %685 = arith.mulf %650, %681 : vector<1x128xf32>
    %686 = arith.mulf %653, %680 : vector<1x128xf32>
    %687 = arith.addf %685, %686 : vector<1x128xf32>
    %c0_311 = arith.constant 0 : index
    %c0_312 = arith.constant 0 : index
    %c1_313 = arith.constant 1 : index
    %c0_314 = arith.constant 0 : index
    %c0_315 = arith.constant 0 : index
    %688 = vector.load %arg2[%c0_311, %c0_312, %c1_313, %c0_314, %c0_315] : memref<1x2x4x8x128xf32, #tpu.memory_space<vmem>>, vector<1x1x1x8x128xf32>
    %689 = vector.shape_cast %688 : vector<1x1x1x8x128xf32> to vector<8x128xf32>
    %c0_316 = arith.constant 0 : index
    %c1_317 = arith.constant 1 : index
    %c1_318 = arith.constant 1 : index
    %c0_319 = arith.constant 0 : index
    %c0_320 = arith.constant 0 : index
    %690 = vector.load %arg2[%c0_316, %c1_317, %c1_318, %c0_319, %c0_320] : memref<1x2x4x8x128xf32, #tpu.memory_space<vmem>>, vector<1x1x1x8x128xf32>
    %691 = vector.shape_cast %690 : vector<1x1x1x8x128xf32> to vector<8x128xf32>
    %692 = vector.shape_cast %684 : vector<1x128xf32> to vector<1x128xf32>
    %693 = vector.broadcast %692 : vector<1x128xf32> to vector<8x128xf32>
    %694 = vector.shape_cast %687 : vector<1x128xf32> to vector<1x128xf32>
    %695 = vector.broadcast %694 : vector<1x128xf32> to vector<8x128xf32>
    %696 = arith.mulf %693, %689 : vector<8x128xf32>
    %697 = arith.mulf %695, %691 : vector<8x128xf32>
    %698 = arith.addf %696, %697 : vector<8x128xf32>
    %699 = arith.mulf %693, %691 : vector<8x128xf32>
    %700 = arith.mulf %695, %689 : vector<8x128xf32>
    %701 = arith.subf %699, %700 : vector<8x128xf32>
    %702 = arith.addf %676, %698 : vector<8x128xf32>
    %703 = arith.addf %679, %701 : vector<8x128xf32>
    %704 = vector.extract_strided_slice %619 {offsets = [4, 0], sizes = [1, 128], strides = [1, 1]} : vector<8x128xf32> to vector<1x128xf32>
    %705 = vector.extract_strided_slice %623 {offsets = [4, 0], sizes = [1, 128], strides = [1, 1]} : vector<8x128xf32> to vector<1x128xf32>
    %706 = arith.mulf %650, %704 : vector<1x128xf32>
    %707 = arith.mulf %653, %705 : vector<1x128xf32>
    %708 = arith.subf %706, %707 : vector<1x128xf32>
    %709 = arith.mulf %650, %705 : vector<1x128xf32>
    %710 = arith.mulf %653, %704 : vector<1x128xf32>
    %711 = arith.addf %709, %710 : vector<1x128xf32>
    %c0_321 = arith.constant 0 : index
    %c0_322 = arith.constant 0 : index
    %c2_323 = arith.constant 2 : index
    %c0_324 = arith.constant 0 : index
    %c0_325 = arith.constant 0 : index
    %712 = vector.load %arg2[%c0_321, %c0_322, %c2_323, %c0_324, %c0_325] : memref<1x2x4x8x128xf32, #tpu.memory_space<vmem>>, vector<1x1x1x8x128xf32>
    %713 = vector.shape_cast %712 : vector<1x1x1x8x128xf32> to vector<8x128xf32>
    %c0_326 = arith.constant 0 : index
    %c1_327 = arith.constant 1 : index
    %c2_328 = arith.constant 2 : index
    %c0_329 = arith.constant 0 : index
    %c0_330 = arith.constant 0 : index
    %714 = vector.load %arg2[%c0_326, %c1_327, %c2_328, %c0_329, %c0_330] : memref<1x2x4x8x128xf32, #tpu.memory_space<vmem>>, vector<1x1x1x8x128xf32>
    %715 = vector.shape_cast %714 : vector<1x1x1x8x128xf32> to vector<8x128xf32>
    %716 = vector.shape_cast %708 : vector<1x128xf32> to vector<1x128xf32>
    %717 = vector.broadcast %716 : vector<1x128xf32> to vector<8x128xf32>
    %718 = vector.shape_cast %711 : vector<1x128xf32> to vector<1x128xf32>
    %719 = vector.broadcast %718 : vector<1x128xf32> to vector<8x128xf32>
    %720 = arith.mulf %717, %713 : vector<8x128xf32>
    %721 = arith.mulf %719, %715 : vector<8x128xf32>
    %722 = arith.addf %720, %721 : vector<8x128xf32>
    %723 = arith.mulf %717, %715 : vector<8x128xf32>
    %724 = arith.mulf %719, %713 : vector<8x128xf32>
    %725 = arith.subf %723, %724 : vector<8x128xf32>
    %726 = arith.addf %702, %722 : vector<8x128xf32>
    %727 = arith.addf %703, %725 : vector<8x128xf32>
    %728 = vector.extract_strided_slice %578 {offsets = [4, 0], sizes = [1, 128], strides = [1, 1]} : vector<8x128xf32> to vector<1x128xf32>
    %729 = vector.extract_strided_slice %581 {offsets = [4, 0], sizes = [1, 128], strides = [1, 1]} : vector<8x128xf32> to vector<1x128xf32>
    %730 = arith.mulf %650, %728 : vector<1x128xf32>
    %731 = arith.mulf %653, %729 : vector<1x128xf32>
    %732 = arith.subf %730, %731 : vector<1x128xf32>
    %733 = arith.mulf %650, %729 : vector<1x128xf32>
    %734 = arith.mulf %653, %728 : vector<1x128xf32>
    %735 = arith.addf %733, %734 : vector<1x128xf32>
    %c0_331 = arith.constant 0 : index
    %c0_332 = arith.constant 0 : index
    %c3_333 = arith.constant 3 : index
    %c0_334 = arith.constant 0 : index
    %c0_335 = arith.constant 0 : index
    %736 = vector.load %arg2[%c0_331, %c0_332, %c3_333, %c0_334, %c0_335] : memref<1x2x4x8x128xf32, #tpu.memory_space<vmem>>, vector<1x1x1x8x128xf32>
    %737 = vector.shape_cast %736 : vector<1x1x1x8x128xf32> to vector<8x128xf32>
    %c0_336 = arith.constant 0 : index
    %c1_337 = arith.constant 1 : index
    %c3_338 = arith.constant 3 : index
    %c0_339 = arith.constant 0 : index
    %c0_340 = arith.constant 0 : index
    %738 = vector.load %arg2[%c0_336, %c1_337, %c3_338, %c0_339, %c0_340] : memref<1x2x4x8x128xf32, #tpu.memory_space<vmem>>, vector<1x1x1x8x128xf32>
    %739 = vector.shape_cast %738 : vector<1x1x1x8x128xf32> to vector<8x128xf32>
    %740 = vector.shape_cast %732 : vector<1x128xf32> to vector<1x128xf32>
    %741 = vector.broadcast %740 : vector<1x128xf32> to vector<8x128xf32>
    %742 = vector.shape_cast %735 : vector<1x128xf32> to vector<1x128xf32>
    %743 = vector.broadcast %742 : vector<1x128xf32> to vector<8x128xf32>
    %744 = arith.mulf %741, %737 : vector<8x128xf32>
    %745 = arith.mulf %743, %739 : vector<8x128xf32>
    %746 = arith.addf %744, %745 : vector<8x128xf32>
    %747 = arith.mulf %741, %739 : vector<8x128xf32>
    %748 = arith.mulf %743, %737 : vector<8x128xf32>
    %749 = arith.subf %747, %748 : vector<8x128xf32>
    %750 = arith.addf %726, %746 : vector<8x128xf32>
    %751 = arith.addf %727, %749 : vector<8x128xf32>
    %c0_341 = arith.constant 0 : index
    %c0_342 = arith.constant 0 : index
    %c0_343 = arith.constant 0 : index
    %c0_344 = arith.constant 0 : index
    %c0_345 = arith.constant 0 : index
    %752 = vector.load %arg4[%c0_341, %c0_342, %c0_343, %c0_344, %c0_345] : memref<1x2x1x8x128xf32, #tpu.memory_space<vmem>>, vector<1x1x1x8x128xf32>
    %753 = vector.shape_cast %752 : vector<1x1x1x8x128xf32> to vector<8x128xf32>
    %754 = vector.shape_cast %750 : vector<8x128xf32> to vector<1x1x1x8x128xf32>
    tpu.vector_store %arg4[%c0_341, %c0_342, %c0_343, %c0_344, %c0_345], %754 {strides = array<i32>} : memref<1x2x1x8x128xf32, #tpu.memory_space<vmem>>, vector<1x1x1x8x128xf32>,
    %c0_346 = arith.constant 0 : index
    %c1_347 = arith.constant 1 : index
    %c0_348 = arith.constant 0 : index
    %c0_349 = arith.constant 0 : index
    %c0_350 = arith.constant 0 : index
    %755 = vector.load %arg4[%c0_346, %c1_347, %c0_348, %c0_349, %c0_350] : memref<1x2x1x8x128xf32, #tpu.memory_space<vmem>>, vector<1x1x1x8x128xf32>
    %756 = vector.shape_cast %755 : vector<1x1x1x8x128xf32> to vector<8x128xf32>
    %757 = vector.shape_cast %751 : vector<8x128xf32> to vector<1x1x1x8x128xf32>
    tpu.vector_store %arg4[%c0_346, %c1_347, %c0_348, %c0_349, %c0_350], %757 {strides = array<i32>} : memref<1x2x1x8x128xf32, #tpu.memory_space<vmem>>, vector<1x1x1x8x128xf32>,
    return
  }
  func.func @transform_0(%arg0: i32, %arg1: i32) -> (i32, i32, i32, i32, i32) {
    %c0_i32 = arith.constant 0 : i32
    %c0_i32_0 = arith.constant 0 : i32
    %c0_i32_1 = arith.constant 0 : i32
    %c0_i32_2 = arith.constant 0 : i32
    return %arg0, %c0_i32, %c0_i32_0, %c0_i32_1, %arg1 : i32, i32, i32, i32, i32
  }
  func.func @transform_1(%arg0: i32, %arg1: i32) -> (i32, i32, i32, i32, i32) {
    %c0_i32 = arith.constant 0 : i32
    %c0_i32_0 = arith.constant 0 : i32
    %c0_i32_1 = arith.constant 0 : i32
    %c0_i32_2 = arith.constant 0 : i32
    return %arg0, %c0_i32, %c0_i32_0, %c0_i32_1, %arg1 : i32, i32, i32, i32, i32
  }
  func.func @transform_2(%arg0: i32, %arg1: i32) -> (i32, i32, i32, i32, i32) {
    %c0_i32 = arith.constant 0 : i32
    %c0_i32_0 = arith.constant 0 : i32
    %c0_i32_1 = arith.constant 0 : i32
    %c0_i32_2 = arith.constant 0 : i32
    return %arg0, %c0_i32, %c0_i32_0, %c0_i32_1, %arg1 : i32, i32, i32, i32, i32
  }
}

</mosaic_0001>

<bundles_post_ra>
// kernel: tpu_custom_call.1
= control target key start
LH: loop header
LB: loop body
LE: loop exit
PB: predicated region body
PF: predicated region fallthrough
CT: control target
= control target key end

     0   :  { %7 = vsyncpa [#allocation3], 0  ;;  %s1934_s0 = inlined_call_operand.hbm [shape: f32[2,2,4,8,128], index: 0, kind: input, shape index: {}]   ;;  %s1935_s1 = inlined_call_operand.hbm [shape: f32[2,2,4,8,128], index: 1, kind: input, shape index: {}]   ;;  %s1936_s2 = inlined_call_operand.hbm [shape: f32[2,2,1,8,128], index: 2, kind: output, shape index: {}]  }
   0x1   :  { %9 = vsyncpa [#allocation3 + $0x1], 0 }
   0x2   :  { %10 = vsyncpa [#allocation6], 0 }
   0x3   :  { %12 = vsyncpa [#allocation6 + $0x1], 0 }
   0x4   :  { %13 = vsyncpa [#allocation4], 0 }
   0x5   :  { %15 = vsyncpa [#allocation4 + $0x1], 0  ;;  %s1378_s9 = smov 0   ;;  %s1380_s10 = smov 0  }
   0x6   :  { %s1382_s11 = smov 0   ;;  %s1384_s12 = smov 0  }
   0x7   :  { %s1386_s13 = smov 0   ;;  %s1388_s14 = smov 0  }
   0x8 LB: > { %s1081_s15 = sadd.s32 4294967295, %s1357_s14   ;;  %s1082_s16 = sadd.s32 4294967294, %s1357_s14   ;;  %s1357_s14 = sphi %s1388_s14, %s21_s14   ;;  %s1353_s13 = sphi %s1386_s13, %s1946_s13   ;;  %s1349_s12 = sphi %s1384_s12, %s1945_s12   ;;  %s1345_s11 = sphi %s1382_s11, %s1944_s11   ;;  %s1341_s10 = sphi %s1380_s10, %s1943_s10   ;;  %s1337_s9 = sphi %s1378_s9, %s1942_s9  }
   0x9   : > { %s33_s17 = sadd.s32 1, %s1353_s13  ;;  %s42_s18 = sadd.s32 1, %s1345_s11 }
   0xa   : > { %p35_p0 = scmp.ge.s32.totalorder %s33_s17, 2  ;;  %p49_p1 = scmp.ne.s32.totalorder %s1345_s11, %s1341_s10 }
   0xb   : > { %p50_p2 = scmp.eq.s32.totalorder %s1357_s14, 0  ;;  %p55_p3 = scmp.ne.s32.totalorder %s1341_s10, %s1337_s9 }
   0xc   : > { %s1948_s17 = smov (%p35_p0, %s33_s17), 0  ;;  %p56_p5 = scmp.eq.s32.totalorder %s1081_s15, 0 }
   0xd   : > { %p1419_p4 = por %p50_p2, %p49_p1  ;;  %s37_s20 = ssub.s32 %s1353_s13, %s1948_s17 }
   0xe   : > { %p109_p6 = scmp.eq.s32.totalorder %s1081_s15, 1  ;;  %p40_p7 = scmp.eq.s32.totalorder %s37_s20, 0 }
   0xf   : > { %p1425_p8 = por %p56_p5, %p55_p3  ;;  %p115_p10 = scmp.eq.s32.totalorder %s1082_s16, 1 }
  0x10   : > { %p1429_p9 = por %p109_p6, %p49_p1  ;;  %p1084_p12 = scmp.ge.s32.totalorder %s1357_s14, 2 }
  0x11   : > { %s1434_s23 = scalar_select %p40_p7, %s1345_s11, %s42_s18  }
  0x12   : > { %p1436_p11 = por %p115_p10, %p55_p3  ;;  %p1139_p13 = scmp.lt.s32.totalorder %s1357_s14, 2 }
  0x13   : > { %s1443_s25 = sand.u32 1, %s1345_s11   ;;  %s1119_s27 = sshll.u32 %s1353_s13, 6 }
  0x14   : > { %s1085_s26 = sshll.u32 %s1443_s25, 6  ;;  %s145_s30 = scalar_lea.hbm %s1934_s0, %s1119_s27 }
  0x15   : > { %s139_s3 = scalar_lea.vmem [#allocation2], %s1085_s26  ;;  %s146_s5 = sshll.u32 %s145_s30, 4  ;;  %s147_s5 = int_to_ptr.hbm [resolvable:$true] %s146_s5 }
  0x16   : > { %s148_s4 = sshll.u32 %s139_s3, 4  ;;  %p1452_p0 = pnand %p1139_p13, %p1419_p4  ;;  %s149_s4 = int_to_ptr.vmem [resolvable:$true] %s148_s4 }
  0x17   : > { %p1091_p1 = scmp.ge.s32.totalorder %s1357_s14, 1  ;;  %s136_s7 = scalar_lea.sflag [#allocation3], %s1443_s25 }
  0x18   : > { %s1359_s8 = smov 128   ;;  %s1360_s15 = smov 8  }
  0x19   : > { %1131 = dma.hbm_to_vmem [thread:$0]  (!%p1452_p0), %s147_s5, 1024, %s149_s4, %s136_s7, %s1359_s8, %s1359_s8, %s1360_s15  }
  0x1a   : > { %p179_p2 = scmp.lt.s32.totalorder %s1357_s14, 3  ;;  %s168_s20 = scalar_lea.hbm %s1935_s1, %s1119_s27 }
  0x1b   : > { %s169_s28 = sshll.u32 %s168_s20, 4  ;;  %s162_s19 = scalar_lea.vmem [#allocation5], %s1085_s26  ;;  %s170_s28 = int_to_ptr.hbm [resolvable:$true] %s169_s28 }
  0x1c   : > { %p180_p3 = pnand %p1091_p1, %p179_p2  ;;  %s171_s29 = sshll.u32 %s162_s19, 4  ;;  %s172_s29 = int_to_ptr.vmem [resolvable:$true] %s171_s29 }
  0x1d   : > { %s159_s30 = scalar_lea.sflag [#allocation6], %s1443_s25  ;;  %s1468_s3 = sand.u32 (!%p180_p3), 1, %s1341_s10  }
  0x1e   : > { %1134 = dma.hbm_to_vmem [thread:$0]  (!%p1452_p0), %s170_s28, 1024, %s172_s29, %s159_s30, %s1359_s8, %s1359_s8, %s1360_s15  }
  0x1f   : > { %183 = sbr.rel (%p180_p3) target bundleno = 310 (0x136), region = 28  ;;  %s1092_s4 = sshll.u32 (!%p180_p3), %s1468_s3, 6 }
  0x20   : > { %s186_s5 = scalar_lea.sflag (!%p180_p3), [#allocation3], %s1468_s3  ;;  %s1472_s7 = scalar_lea.vmem (!%p180_p3), [#allocation2], %s1092_s4 }
  0x24   : > { %1324 = dma.done.wait (%p1425_p8), %s186_s5, 1024  }
  0x25   : > { %1326 = vsyncadd (%p1425_p8), %s186_s5, 4294966272  ;;  %s196_s25 = scalar_lea.sflag [#allocation6], %s1468_s3  ;;  %s1479_s26 = scalar_lea.vmem [#allocation5], %s1092_s4 }
  0x26   : > { %1328 = dma.done.wait (%p1425_p8), %s196_s25, 1024  }
  0x27   : > { %1330 = vsyncadd (%p1425_p8), %s196_s25, 4294966272  ;;  %v226_v0 = vld [vmem:[%s1472_s7] sm:$0xff]  ;;  %v1488_v2 = vld [vmem:[%s1472_s7 + $0x8] sm:$0xff]  ;;  %vm596_vm0 = vcmask 1040384   ;;  %vm598_vm1 = vcmask 1041408   ;;  %vm600_vm2 = vcmask 1042432  }
  0x28   : > { %v1095_v1 = vld [vmem:[%s1472_s7 + $0x20] sm:$0xff]  ;;  %v229_v3 = vmul.f32 %v226_v0, %v226_v0  ;;  %v1491_v5 = vld [vmem:[%s1472_s7 + $0x28] sm:$0xff]  ;;  %v1494_v6 = vld [vmem:[%s1472_s7 + $0x10] sm:$0xff]  ;;  %v244_v8 = vmul.f32 %v1488_v2, %v226_v0  ;;  %v315_v34 = vmul.f32 %v1488_v2, %v1488_v2  ;;  %vm602_vm3 = vcmask 1043456   ;;  %s1094_s21 = sshll.u32 %s1468_s3, 4  ;;  %s1121_s27 = sshll.u32 %s1349_s12, 4 }
  0x29   : > { %v230_v4 = vmul.f32 %v1095_v1, %v1095_v1  ;;  %v1497_v7 = vld [vmem:[%s1472_s7 + $0x30] sm:$0xff]  ;;  %v245_v9 = vmul.f32 %v1491_v5, %v1095_v1  ;;  %v1502_v10 = vld [vmem:[%s1472_s7 + $0x18] sm:$0xff]  ;;  %v254_v12 = vmul.f32 %v1488_v2, %v1095_v1  ;;  %v255_v13 = vmul.f32 %v1491_v5, %v226_v0  ;;  %s967_s15 = scalar_lea.hbm %s1936_s2, %s1121_s27  ;;  %s225_s16 = scalar_lea.vmem [#allocation7], %s1094_s21 }
  0x2a   : > { %v1505_v11 = vld [vmem:[%s1472_s7 + $0x38] sm:$0xff]  ;;  %v269_v14 = vmul.f32 %v1494_v6, %v226_v0  ;;  %v270_v15 = vmul.f32 %v1497_v7, %v1095_v1  ;;  %v279_v17 = vmul.f32 %v1494_v6, %v1095_v1  ;;  %v304_v18 = vmul.f32 %v1502_v10, %v1095_v1  ;;  %s968_s18 = sshll.u32 %s225_s16, 4  ;;  %s970_s20 = sshll.u32 %s967_s15, 4  ;;  %s969_s18 = int_to_ptr.vmem [resolvable:$true] %s968_s18  ;;  %s971_s20 = int_to_ptr.hbm [resolvable:$true] %s970_s20 }
  0x2b   : > { %v231_v16 = vadd.f32 %v230_v4, %v229_v3  ;;  %v305_v19 = vmul.f32 %v1505_v11, %v226_v0  ;;  %v246_v20 = vadd.f32 %v245_v9, %v244_v8  ;;  %v280_v21 = vmul.f32 %v1497_v7, %v226_v0  ;;  %s955_s12 = scalar_lea.sflag [#allocation4], %s1468_s3  ;;  %s1285_s28 = sshra.s32 %s971_s20, 4  ;;  %s1286_s28 = int_to_ptr.hbm [resolvable:$true] %s1285_s28 }
  0x2c   : > { %v294_v22 = vmul.f32 %v1502_v10, %v226_v0  ;;  %v295_v23 = vmul.f32 %v1505_v11, %v1095_v1  ;;  %v256_v24 = vsub.f32 %v254_v12, %v255_v13  ;;  %v271_v25 = vadd.f32 %v270_v15, %v269_v14  ;;  %s1287_s19 = scalar_lea.hbm %s1286_s28, 16  ;;  %s1291_s4 = scalar_lea.hbm %s1936_s2, 32 }
  0x2d   : > { %v306_v26 = vsub.f32 %v304_v18, %v305_v19  ;;  %v232_v27 = vrot.slane %v231_v16, 4  ;;  %v247_v28 = vrot.slane %v246_v20, 4  ;;  %v281_v29 = vsub.f32 %v279_v17, %v280_v21  ;;  %p1288_p4 = scmp.ne.s32.totalorder %s1286_s28, %s1287_s19  ;;  %p1292_p7 = scmp.lt.s32.totalorder %s1286_s28, %s1936_s2 }
  0x2e   : > { %v296_v30 = vadd.f32 %v295_v23, %v294_v22  ;;  %v257_v31 = vrot.slane %v256_v24, 4  ;;  %v272_v32 = vrot.slane %v271_v25, 4  ;;  %v316_v35 = vmul.f32 %v1491_v5, %v1491_v5  ;;  %p1293_p8 = scmp.lt.s32.totalorder %s1291_s4, %s1287_s19 }
  0x2f   : > { %v307_v33 = vrot.slane %v306_v26, 4  ;;  %v233_v36 = vadd.f32 %v232_v27, %v231_v16  ;;  %v248_v37 = vadd.f32 %v247_v28, %v246_v20  ;;  %v282_v38 = vrot.slane %v281_v29, 4  ;;  %p1289_p5 = pnand %p1288_p4, %p1429_p9 }
  0x30   : > { %v297_v39 = vrot.slane %v296_v30, 4  ;;  %v258_v40 = vadd.f32 %v257_v31, %v256_v24  ;;  %v273_v41 = vadd.f32 %v272_v32, %v271_v25  ;;  %v317_v43 = vadd.f32 %v316_v35, %v315_v34  ;;  %p1294_p10 = por %p1293_p8, %p1292_p7 }
  0x31   : > { %v308_v42 = vadd.f32 %v307_v33, %v306_v26  ;;  %v234_v44 = vrot.slane %v233_v36, 2  ;;  %v249_v45 = vrot.slane %v248_v37, 2  ;;  %v283_v46 = vadd.f32 %v282_v38, %v281_v29  ;;  %p1290_p6 = pneg %p1289_p5 }
  0x32   : > { %v298_v47 = vadd.f32 %v297_v39, %v296_v30  ;;  %v259_v48 = vrot.slane %v258_v40, 2  ;;  %v274_v49 = vrot.slane %v273_v41, 2  ;;  %v318_v51 = vrot.slane %v317_v43, 4 }
  0x33   : > { %v309_v50 = vrot.slane %v308_v42, 2  ;;  %v235_v52 = vadd.f32 %v234_v44, %v233_v36  ;;  %v250_v53 = vadd.f32 %v249_v45, %v248_v37  ;;  %v284_v54 = vrot.slane %v283_v46, 2  ;;  %p1295_p13 = pnand %p1294_p10, %p1290_p6 }
  0x34   : > { %v299_v55 = vrot.slane %v298_v47, 2  ;;  %v260_v56 = vadd.f32 %v259_v48, %v258_v40  ;;  %v275_v57 = vadd.f32 %v274_v49, %v273_v41  ;;  %v347_v58 = vmul.f32 %v1502_v10, %v1488_v2  ;;  %v1550_v41 = vld [vmem:[%s1479_s26] sm:$0xff]  ;;  %v1560_v49 = vld [vmem:[%s1479_s26 + $0x8] sm:$0xff] }
  0x35   : > { %v348_v59 = vmul.f32 %v1505_v11, %v1491_v5  ;;  %v310_v60 = vadd.f32 %v309_v50, %v308_v42  ;;  %v319_v61 = vadd.f32 %v318_v51, %v317_v43  ;;  %v236_v62 = vrot.slane %v235_v52, 1  ;;  %v1102_v48 = vld [vmem:[%s1479_s26 + $0x20] sm:$0xff] }
  0x36   : > { %v285_v63 = vadd.f32 %v284_v54, %v283_v46  ;;  %v300_v0 = vadd.f32 %v299_v55, %v298_v47  ;;  %v357_v1 = vmul.f32 %v1502_v10, %v1491_v5  ;;  %v358_v3 = vmul.f32 %v1505_v11, %v1488_v2  ;;  %v1569_v54 = vld [vmem:[%s1479_s26 + $0x28] sm:$0xff] }
  0x37   : > { %v251_v4 = vrot.slane %v250_v53, 1  ;;  %v261_v8 = vrot.slane %v260_v56, 1  ;;  %v276_v9 = vrot.slane %v275_v57, 1  ;;  %v349_v12 = vadd.f32 %v348_v59, %v347_v58 }
  0x38   : > { %v311_v13 = vrot.slane %v310_v60, 1  ;;  %v320_v14 = vrot.slane %v319_v61, 2  ;;  %v379_v15 = vmul.f32 %v1502_v10, %v1494_v6  ;;  %v380_v16 = vmul.f32 %v1505_v11, %v1497_v7 }
  0x39   : > { %v389_v17 = vmul.f32 %v1502_v10, %v1497_v7  ;;  %v390_v18 = vmul.f32 %v1505_v11, %v1494_v6  ;;  %v237_v19 = vadd.f32 %v236_v62, %v235_v52  ;;  %v286_v20 = vrot.slane %v285_v63, 1 }
  0x3a   : > { %v301_v21 = vrot.slane %v300_v0, 1  ;;  %v359_v22 = vsub.f32 %v357_v1, %v358_v3  ;;  %v252_v23 = vadd.f32 %v251_v4, %v250_v53  ;;  %v262_v24 = vadd.f32 %v261_v8, %v260_v56 }
  0x3b   : > { %v277_v25 = vadd.f32 %v276_v9, %v275_v57  ;;  %v350_v26 = vrot.slane %v349_v12, 4  ;;  %v312_v27 = vadd.f32 %v311_v13, %v310_v60  ;;  %v321_v28 = vadd.f32 %v320_v14, %v319_v61 }
  0x3c   : > { %v326_v29 = vmul.f32 %v1494_v6, %v1488_v2  ;;  %v381_v30 = vadd.f32 %v380_v16, %v379_v15  ;;  %v327_v31 = vmul.f32 %v1497_v7, %v1491_v5  ;;  %v336_v32 = vmul.f32 %v1494_v6, %v1491_v5 }
  0x3d   : > { %v337_v33 = vmul.f32 %v1497_v7, %v1488_v2  ;;  %v391_v34 = vsub.f32 %v389_v17, %v390_v18  ;;  %v287_v35 = vadd.f32 %v286_v20, %v285_v63  ;;  %v302_v36 = vadd.f32 %v301_v21, %v300_v0  ;;  %v1581_v63 = vld [vmem:[%s1479_s26 + $0x10] sm:$0xff]  ;;  %v1593_v17 = vld [vmem:[%s1479_s26 + $0x18] sm:$0xff] }
  0x3e   : > { %v360_v37 = vrot.slane %v359_v22, 4  ;;  %v1545_v38 = vmul.f32 0.125, %v237_v19  ;;  %v1547_v39 = vmul.f32 0.125, %v252_v23  ;;  %v351_v40 = vadd.f32 %v350_v26, %v349_v12 }
  0x3f   : > { %v1552_v42 = vmul.f32 0.125, %v262_v24  ;;  %v1554_v5 = vmul.f32 0.125, %v277_v25  ;;  %v322_v43 = vrot.slane %v321_v28, 1  ;;  %v382_v2 = vrot.slane %v381_v30, 4 }
  0x40   : > { %v1556_v44 = vmul.f32 0.125, %v312_v27  ;;  %v328_v45 = vadd.f32 %v327_v31, %v326_v29  ;;  %v338_v46 = vsub.f32 %v336_v32, %v337_v33  ;;  %v392_v47 = vrot.slane %v391_v34, 4 }
  0x41   : > { %v1562_v50 = vmul.f32 0.125, %v287_v35  ;;  %v1564_v51 = vmul.f32 0.125, %v302_v36  ;;  %v361_v52 = vadd.f32 %v360_v37, %v359_v22  ;;  %v414_v53 = vmul.f32 %v1550_v41, %v1550_v41  ;;  %v1597_v22 = vld [vmem:[%s1479_s26 + $0x38] sm:$0xff] }
  0x42   : > { %v314_v55 = vsub.f32 0.0, %v1556_v44  ;;  %v352_v56 = vrot.slane %v351_v40, 2  ;;  %v400_v57 = vmul.f32 %v1502_v10, %v1502_v10  ;;  %v401_v58 = vmul.f32 %v1505_v11, %v1505_v11  ;;  %v1585_v10 = vld [vmem:[%s1479_s26 + $0x30] sm:$0xff] }
  0x43   : > { %v1576_v59 = vadd.f32 %v322_v43, %v321_v28  ;;  %v383_v60 = vadd.f32 %v382_v2, %v381_v30  ;;  %v415_v61 = vmul.f32 %v1102_v48, %v1102_v48  ;;  %v429_v62 = vmul.f32 %v1560_v49, %v1550_v41 }
  0x44   : > { %v329_v0 = vrot.slane %v328_v45, 4  ;;  %v339_v1 = vrot.slane %v338_v46, 4  ;;  %v393_v3 = vadd.f32 %v392_v47, %v391_v34  ;;  %v430_v4 = vmul.f32 %v1569_v54, %v1102_v48 }
  0x45   : > { %v362_v8 = vrot.slane %v361_v52, 2  ;;  %v416_v11 = vadd.f32 %v415_v61, %v414_v53  ;;  %v439_v9 = vmul.f32 %v1560_v49, %v1102_v48  ;;  %v440_v12 = vmul.f32 %v1569_v54, %v1550_v41 }
  0x46   : > { %v353_v13 = vadd.f32 %v352_v56, %v351_v40  ;;  %v402_v14 = vadd.f32 %v401_v58, %v400_v57  ;;  %v431_v15 = vadd.f32 %v430_v4, %v429_v62  ;;  %v454_v16 = vmul.f32 %v1581_v63, %v1550_v41 }
  0x47   : > { %v384_v18 = vrot.slane %v383_v60, 2  ;;  %v417_v19 = vrot.slane %v416_v11, 4  ;;  %v441_v20 = vsub.f32 %v439_v9, %v440_v12  ;;  %v455_v21 = vmul.f32 %v1585_v10, %v1102_v48 }
  0x48   : > { %v394_v23 = vrot.slane %v393_v3, 2  ;;  %v432_v24 = vrot.slane %v431_v15, 4  ;;  %v464_v25 = vmul.f32 %v1581_v63, %v1102_v48  ;;  %v465_v26 = vmul.f32 %v1585_v10, %v1550_v41 }
  0x49   : > { %v363_v27 = vadd.f32 %v362_v8, %v361_v52  ;;  %v368_v28 = vmul.f32 %v1494_v6, %v1494_v6  ;;  %v418_v29 = vadd.f32 %v417_v19, %v416_v11  ;;  %v479_v30 = vmul.f32 %v1593_v17, %v1550_v41 }
  0x4a   : > { %v403_v31 = vrot.slane %v402_v14, 4  ;;  %v442_v32 = vrot.slane %v441_v20, 4  ;;  %v456_v33 = vadd.f32 %v455_v21, %v454_v16  ;;  %v480_v34 = vmul.f32 %v1597_v22, %v1102_v48 }
  0x4b   : > { %v330_v35 = vadd.f32 %v329_v0, %v328_v45  ;;  %v340_v36 = vadd.f32 %v339_v1, %v338_v46  ;;  %v354_v37 = vrot.slane %v353_v13, 1  ;;  %v433_v40 = vadd.f32 %v432_v24, %v431_v15 }
  0x4c   : > { %v385_v43 = vadd.f32 %v384_v18, %v383_v60  ;;  %v395_v2 = vadd.f32 %v394_v23, %v393_v3  ;;  %v466_v47 = vsub.f32 %v464_v25, %v465_v26  ;;  %v481_v52 = vadd.f32 %v480_v34, %v479_v30 }
  0x4d   : > { %v369_v6 = vmul.f32 %v1497_v7, %v1497_v7  ;;  %v419_v53 = vrot.slane %v418_v29, 2  ;;  %v489_v56 = vmul.f32 %v1593_v17, %v1102_v48  ;;  %v490_v57 = vmul.f32 %v1597_v22, %v1550_v41 }
  0x4e   : > { %v364_v58 = vrot.slane %v363_v27, 1  ;;  %v404_v61 = vadd.f32 %v403_v31, %v402_v14  ;;  %v443_v62 = vadd.f32 %v442_v32, %v441_v20  ;;  %v457_v45 = vrot.slane %v456_v33, 4 }
  0x4f   : > { %v331_v46 = vrot.slane %v330_v35, 2  ;;  %v341_v0 = vrot.slane %v340_v36, 2  ;;  %v434_v1 = vrot.slane %v433_v40, 2  ;;  %v482_v60 = vrot.slane %v481_v52, 4 }
  0x50   : > { %v355_v3 = vadd.f32 %v354_v37, %v353_v13  ;;  %v386_v4 = vrot.slane %v385_v43, 1  ;;  %v396_v8 = vrot.slane %v395_v2, 1  ;;  %v467_v11 = vrot.slane %v466_v47, 4 }
  0x51   : > { %v420_v9 = vadd.f32 %v419_v53, %v418_v29  ;;  %v491_v7 = vsub.f32 %v489_v56, %v490_v57  ;;  %v500_v48 = vmul.f32 %v1560_v49, %v1560_v49  ;;  %v501_v41 = vmul.f32 %v1569_v54, %v1569_v54 }
  0x52   : > { %v365_v12 = vadd.f32 %v364_v58, %v363_v27  ;;  %v405_v14 = vrot.slane %v404_v61, 2  ;;  %v444_v15 = vrot.slane %v443_v62, 2  ;;  %v458_v16 = vadd.f32 %v457_v45, %v456_v33 }
  0x53   : > { %v1616_v18 = vadd.f32 %v331_v46, %v330_v35  ;;  %v1618_v19 = vadd.f32 %v369_v6, %v368_v28  ;;  %v435_v13 = vadd.f32 %v434_v1, %v433_v40  ;;  %v483_v20 = vadd.f32 %v482_v60, %v481_v52 }
  0x54   : > { %v1620_v21 = vadd.f32 %v341_v0, %v340_v36  ;;  %v387_v23 = vadd.f32 %v386_v4, %v385_v43  ;;  %v397_v24 = vadd.f32 %v396_v8, %v395_v2  ;;  %v468_v25 = vadd.f32 %v467_v11, %v466_v47 }
  0x55   : > { %v1622_v26 = vmul.f32 0.125, %v355_v3  ;;  %v421_v29 = vrot.slane %v420_v9, 1  ;;  %v492_v30 = vrot.slane %v491_v7, 4  ;;  %v502_v31 = vadd.f32 %v501_v41, %v500_v48 }
  0x56   : > { %v1624_v27 = vmul.f32 0.125, %v365_v12  ;;  %v1626_v32 = vadd.f32 %v405_v14, %v404_v61  ;;  %v445_v33 = vadd.f32 %v444_v15, %v443_v62  ;;  %v459_v34 = vrot.slane %v458_v16, 2 }
  0x57   : > { %v436_v28 = vrot.slane %v435_v13, 1  ;;  %v484_v35 = vrot.slane %v483_v20, 2  ;;  %v511_v36 = vmul.f32 %v1581_v63, %v1560_v49  ;;  %v512_v37 = vmul.f32 %v1585_v10, %v1569_v54 }
  0x58   : > { %v367_v40 = vsub.f32 0.0, %v1624_v27  ;;  %v1633_v43 = vmul.f32 0.125, %v387_v23  ;;  %v1635_v2 = vmul.f32 0.125, %v397_v24  ;;  %v469_v47 = vrot.slane %v468_v25, 2 }
  0x59   : > { %v422_v52 = vadd.f32 %v421_v29, %v420_v9  ;;  %v493_v6 = vadd.f32 %v492_v30, %v491_v7  ;;  %v503_v53 = vrot.slane %v502_v31, 4  ;;  %v532_v56 = vmul.f32 %v1593_v17, %v1560_v49 }
  0x5a   : > { %v407_v57 = vrot.slane %v1626_v32, 1  ;;  %v446_v58 = vrot.slane %v445_v33, 1  ;;  %v460_v61 = vadd.f32 %v459_v34, %v458_v16  ;;  %v533_v62 = vmul.f32 %v1597_v22, %v1569_v54 }
  0x5b   : > { %v437_v45 = vadd.f32 %v436_v28, %v435_v13  ;;  %v485_v46 = vadd.f32 %v484_v35, %v483_v20  ;;  %v513_v0 = vadd.f32 %v512_v37, %v511_v36  ;;  %v542_v1 = vmul.f32 %v1593_v17, %v1569_v54 }
  0x5c   : > { %v521_v60 = vmul.f32 %v1581_v63, %v1569_v54  ;;  %v522_v3 = vmul.f32 %v1585_v10, %v1560_v49  ;;  %v534_v4 = vadd.f32 %v533_v62, %v532_v56  ;;  %v543_v8 = vmul.f32 %v1597_v22, %v1560_v49 }
  0x5d   : > { %v423_v11 = vmul.f32 0.125, %v422_v52  ;;  %v470_v9 = vadd.f32 %v469_v47, %v468_v25  ;;  %v494_v7 = vrot.slane %v493_v6, 2  ;;  %v504_v48 = vadd.f32 %v503_v53, %v502_v31 }
  0x5e   : > { %v447_v41 = vadd.f32 %v446_v58, %v445_v33  ;;  %v461_v12 = vrot.slane %v460_v61, 1  ;;  %v544_v14 = vsub.f32 %v542_v1, %v543_v8  ;;  %v564_v15 = vmul.f32 %v1593_v17, %v1581_v63 }
  0x5f   : > { %v1652_v16 = vmul.f32 0.125, %v437_v45  ;;  %v486_v54 = vrot.slane %v485_v46, 1  ;;  %v514_v13 = vrot.slane %v513_v0, 4  ;;  %v535_v20 = vrot.slane %v534_v4, 4 }
  0x60   : > { %v523_v23 = vsub.f32 %v521_v60, %v522_v3  ;;  %v545_v24 = vrot.slane %v544_v14, 4  ;;  %v565_v49 = vmul.f32 %v1597_v22, %v1585_v10  ;;  %v574_v25 = vmul.f32 %v1593_v17, %v1585_v10 }
  0x61   : > { %v424_v29 = vadd.f32 0.0007071068, %v423_v11  ;;  %v471_v30 = vrot.slane %v470_v9, 1  ;;  %v495_v31 = vadd.f32 %v494_v7, %v493_v6  ;;  %v505_v33 = vrot.slane %v504_v48, 2 }
  0x62   : > { %v1658_v34 = vmul.f32 0.125, %v447_v41  ;;  %v546_v28 = vadd.f32 %v545_v24, %v544_v14  ;;  %v566_v35 = vadd.f32 %v565_v49, %v564_v15  ;;  %v575_v36 = vmul.f32 %v1597_v22, %v1581_v63 }
  0x63   : > { %v462_v37 = vadd.f32 %v461_v12, %v460_v61  ;;  %v515_v47 = vadd.f32 %v514_v13, %v513_v0  ;;  %v536_v52 = vadd.f32 %v535_v20, %v534_v4  ;;  %v585_v53 = vmul.f32 %v1593_v17, %v1593_v17 }
  0x64   : > { %v487_v56 = vadd.f32 %v486_v54, %v485_v46  ;;  %v524_v58 = vrot.slane %v523_v23, 4  ;;  %v567_v62 = vrot.slane %v566_v35, 4  ;;  %v576_v45 = vsub.f32 %v574_v25, %v575_v36 }
  0x65   : > { %v496_v1 = vrot.slane %v495_v31, 1  ;;  %v506_v6 = vadd.f32 %v505_v33, %v504_v48  ;;  %v547_v60 = vrot.slane %v546_v28, 2  ;;  %v586_v3 = vmul.f32 %v1597_v22, %v1597_v22 }
  0x66   : > { %v553_v8 = vmul.f32 %v1581_v63, %v1581_v63  ;;  %v554_v61 = vmul.f32 %v1585_v10, %v1585_v10  ;;  %v568_v0 = vadd.f32 %v567_v62, %v566_v35  ;;  %v577_v4 = vrot.slane %v576_v45, 4 }
  0x67   : > { %v472_v11 = vadd.f32 %v471_v30, %v470_v9  ;;  %v516_v17 = vrot.slane %v515_v47, 2  ;;  %v537_v46 = vrot.slane %v536_v52, 2  ;;  %v587_v7 = vadd.f32 %v586_v3, %v585_v53 }
  0x68   : > { %v1670_v41 = vmul.f32 0.125, %v462_v37  ;;  %v525_v12 = vadd.f32 %v524_v58, %v523_v23  ;;  %v569_v48 = vrot.slane %v568_v0, 2  ;;  %v578_v14 = vadd.f32 %v577_v4, %v576_v45 }
  0x69   : > { %v1672_v15 = vmul.f32 0.125, %v487_v56  ;;  %v548_v22 = vadd.f32 %v547_v60, %v546_v28  ;;  %v588_v54 = vrot.slane %v587_v7, 4  ;;  %v497_v63 = vadd.f32 %v496_v1, %v495_v31 }
  0x6a   : > { %v507_v13 = vrot.slane %v506_v6, 1  ;;  %v555_v20 = vadd.f32 %v554_v61, %v553_v8  ;;  %v579_v10 = vrot.slane %v578_v14, 2  ;;  %v517_v24 = vadd.f32 %v516_v17, %v515_v47 }
  0x6b   : > { %v538_v49 = vadd.f32 %v537_v46, %v536_v52  ;;  %v589_v9 = vadd.f32 %v588_v54, %v587_v7  ;;  %v597_v25 = vsel %vm596_vm0, %v424_v29, %v1652_v16  ;;  %v526_v30 = vrot.slane %v525_v12, 2 }
  0x6c   : > { %v570_v33 = vadd.f32 %v569_v48, %v568_v0  ;;  %v580_v23 = vadd.f32 %v579_v10, %v578_v14  ;;  %v549_v35 = vrot.slane %v548_v22, 1  ;;  %v599_v28 = vsel %vm598_vm1, %v597_v25, %v1670_v41 }
  0x6d   : > { %v590_v36 = vrot.slane %v589_v9, 2  ;;  %v1678_v31 = vmul.f32 0.125, %v472_v11  ;;  %v498_v37 = vmul.f32 0.125, %v497_v63  ;;  %v556_v53 = vrot.slane %v555_v20, 4 }
  0x6e   : > { %v581_v47 = vrot.slane %v580_v23, 1  ;;  %v539_v52 = vrot.slane %v538_v49, 1  ;;  %v601_v29 = vsel %vm600_vm2, %v599_v28, %v1672_v15  ;;  %v408_v58 = vadd.f32 %v407_v57, %v1626_v32 }
  0x6f   : > { %v591_v56 = vadd.f32 %v590_v36, %v589_v9  ;;  %v508_v62 = vadd.f32 %v507_v13, %v506_v6  ;;  %v527_v45 = vadd.f32 %v526_v30, %v525_v12  ;;  %v571_v1 = vrot.slane %v570_v33, 1 }
  0x70   : > { %v518_v60 = vrot.slane %v517_v24, 1  ;;  %v550_v3 = vadd.f32 %v549_v35, %v548_v22  ;;  %v610_v61 = vsel %vm596_vm0, 0.0007071068, %v1658_v34  ;;  %v582_v0 = vadd.f32 %v581_v47, %v580_v23 }
  0x71   : > { %v592_v8 = vrot.slane %v591_v56, 1  ;;  %v603_v4 = vsel %vm602_vm3, %v601_v29, %v1545_v38  ;;  %vm604_vm4 = vcmask 1044480   ;;  %v611_v11 = vsel %vm598_vm1, %v610_v61, %v1678_v31 }
  0x72   : > { %v540_v17 = vadd.f32 %v539_v52, %v538_v49  ;;  %v557_v46 = vadd.f32 %v556_v53, %v555_v20  ;;  %v612_v57 = vsel %vm600_vm2, %v611_v11, %v498_v37  ;;  %v509_v6 = vmul.f32 0.125, %v508_v62 }
  0x73   : > { %v593_v32 = vadd.f32 %v592_v8, %v591_v56  ;;  %v528_v7 = vrot.slane %v527_v45, 1  ;;  %v572_v12 = vadd.f32 %v571_v1, %v570_v33  ;;  %v613_v48 = vsel %vm602_vm3, %v612_v57, 0.0 }
  0x74   : > { %v551_v14 = vmul.f32 0.125, %v550_v3  ;;  %v605_v54 = vsel %vm604_vm4, %v603_v4, %v1547_v39  ;;  %vm606_vm5 = vcmask 1045504   ;;  %v499_v38 = vsub.f32 0.0, %v498_v37 }
  0x75   : > { %v594_v22 = vmul.f32 0.125, %v593_v32  ;;  %v519_v63 = vadd.f32 %v518_v60, %v517_v24  ;;  %v1695_v13 = vmul.f32 0.125, %v582_v0  ;;  %v614_v20 = vsel %vm604_vm4, %v613_v48, %v1552_v42 }
  0x76   : > { %v541_v10 = vmul.f32 0.125, %v540_v17  ;;  %v552_v49 = vsub.f32 0.0, %v551_v14  ;;  %v558_v9 = vrot.slane %v557_v46, 2  ;;  %v1699_v30 = vmul.f32 0.125, %v572_v12 }
  0x77   : > { %v595_v25 = vadd.f32 0.0007071068, %v594_v22  ;;  %v584_v33 = vsub.f32 0.0, %v1695_v13  ;;  %v607_v23 = vsel %vm606_vm5, %v605_v54, %v1554_v5  ;;  %vm608_vm6 = vcmask 1046528  }
  0x78   : > { %v510_v35 = vadd.f32 0.0007071068, %v509_v6  ;;  %v529_v36 = vadd.f32 %v528_v7, %v527_v45  ;;  %v615_v24 = vsel %vm606_vm5, %v614_v20, %v1562_v50  ;;  %v645_v28 = vsel %vm596_vm0, %v1672_v15, %v541_v10 }
  0x79   : > { %v399_v37 = vsub.f32 0.0, %v1635_v2  ;;  %v409_v53 = vmul.f32 0.125, %v408_v58  ;;  %v449_v47 = vsub.f32 0.0, %v1658_v34  ;;  %v646_v52 = vsel %vm598_vm1, %v645_v28, %v1699_v30 }
  0x7a   : > { %v559_v56 = vadd.f32 %v558_v9, %v557_v46  ;;  %v1714_v29 = vsel %vm608_vm6, %v607_v23, %v1564_v51  ;;  %v647_v62 = vsel %vm600_vm2, %v646_v52, %v595_v25  ;;  %v652_v45 = vsel %vm596_vm0, %v499_v38, %v552_v49 }
  0x7b   : > { %v520_v1 = vmul.f32 0.125, %v519_v63  ;;  %v1720_v15 = vsel %vm608_vm6, %v615_v24, %v1556_v44  ;;  %v648_v34 = vsel %vm602_vm3, %v647_v62, %v1564_v51  ;;  %v653_v58 = vsel %vm598_vm1, %v652_v45, %v584_v33 }
  0x7c   : > { %v530_v60 = vmul.f32 0.125, %v529_v36  ;;  %v617_v3 = vsel %vm596_vm0, %v1652_v16, %v510_v35  ;;  %v649_v8 = vsel %vm604_vm4, %v648_v34, %v1622_v26  ;;  %v654_v61 = vsel %vm600_vm2, %v653_v58, 0.0007071068 }
  0x7d   : > { %v624_v0 = vsel %vm596_vm0, %v449_v47, 0.0007071068  ;;  %v650_v4 = vsel %vm606_vm5, %v649_v8, %v1633_v43  ;;  %v655_v51 = vsel %vm602_vm3, %v654_v61, %v314_v55  ;;  %v659_v11 = vmul.f32 %v1714_v29, %v1714_v29 }
  0x7e   : > { %v560_v17 = vrot.slane %v559_v56, 1  ;;  %v1739_v16 = vsel %vm608_vm6, %v650_v4, %v409_v53  ;;  %v656_v46 = vsel %vm604_vm4, %v655_v51, %v367_v40  ;;  %v660_v32 = vmul.f32 %v1720_v15, %v1720_v15 }
  0x7f   : > { %v333_v57 = vrot.slane %v1616_v18, 1  ;;  %v371_v44 = vrot.slane %v1618_v19, 4  ;;  %v618_v55 = vsel %vm598_vm1, %v617_v3, %v520_v1  ;;  %v657_v6 = vsel %vm606_vm5, %v656_v46, %v399_v37 }
  0x80   : > { %v343_v7 = vrot.slane %v1620_v21, 1  ;;  %v625_v12 = vsel %vm598_vm1, %v624_v0, %v530_v60  ;;  %v1753_v48 = vsel %vm608_vm6, %v657_v6, 0.0  ;;  %v661_v22 = vadd.f32 %v660_v32, %v659_v11 }
  0x81   : > { %v264_v40 = vsub.f32 0.0, %v1552_v42  ;;  %v561_v54 = vadd.f32 %v560_v17, %v559_v56  ;;  %v619_v38 = vsel %vm600_vm2, %v618_v55, %v541_v10  ;;  %v334_v63 = vadd.f32 %v333_v57, %v1616_v18 }
  0x82   : > { %1193 = vrcp.f32 %v661_v22  ;;  %v372_v20 = vadd.f32 %v371_v44, %v1618_v19  ;;  %v626_v49 = vsel %vm600_vm2, %v625_v12, %v551_v14  ;;  %v324_v9 = vmul.f32 0.125, %v1576_v59 }
  0x83   : > { %v344_v25 = vadd.f32 %v343_v7, %v1620_v21  ;;  %v620_v33 = vsel %vm602_vm3, %v619_v38, %v1547_v39  ;;  %v562_v23 = vmul.f32 0.125, %v561_v54  ;;  %v627_v42 = vsel %vm602_vm3, %v626_v49, %v264_v40 }
  0x84   : > { %v335_v35 = vmul.f32 0.125, %v334_v63  ;;  %v373_v36 = vrot.slane %v372_v20, 2  ;;  %v474_v18 = vsub.f32 0.0, %v1678_v31  ;;  %v531_v28 = vsub.f32 0.0, %v530_v60 }
  0x85   : > { %v345_v24 = vmul.f32 0.125, %v344_v25  ;;  %v621_v19 = vsel %vm604_vm4, %v620_v33, %v324_v9  ;;  %v628_v14 = vsel %vm604_vm4, %v627_v42, 0.0  ;;  %v563_v37 = vadd.f32 0.0007071068, %v562_v23 }
  0x86   : > { %v622_v21 = vsel %vm606_vm5, %v621_v19, %v335_v35  ;;  %v631_v39 = vsel %vm596_vm0, %v1670_v41, %v520_v1  ;;  %v667_v47 = vsub.f32 0.0, %v1720_v15  ;;  %v374_v52 = vadd.f32 %v373_v36, %v372_v20 }
  0x87   : > { %v629_v56 = vsel %vm606_vm5, %v628_v14, %v345_v24  ;;  %v638_v31 = vsel %vm596_vm0, %v474_v18, %v531_v28  ;;  %v623_v45 = vsel %vm608_vm6, %v622_v21, %v1622_v26  ;;  %v632_v34 = vsel %vm598_vm1, %v631_v39, %v563_v37 }
  0x88   : > { %v1194_v10 = vpop.eup %1193  ;;  %v630_v58 = vsel %vm608_vm6, %v629_v56, %v1624_v27  ;;  %v639_v60 = vsel %vm598_vm1, %v638_v31, 0.0007071068  ;;  %v375_v3 = vrot.slane %v374_v52, 1  ;;  %v633_v8 = vsel %vm600_vm2, %v632_v34, %v1699_v30 }
  0x89   : > { %v663_v59 = vmul.f32 %v1194_v10, %v661_v22  ;;  %v289_v4 = vsub.f32 0.0, %v1562_v50  ;;  %v640_v26 = vsel %vm600_vm2, %v639_v60, %v1695_v13  ;;  %v677_v51 = vperm.slane %v623_v45, 0 }
  0x8a   : > { %v678_v11 = vperm.slane %v630_v58, 0  ;;  %v376_v57 = vadd.f32 %v375_v3, %v374_v52  ;;  %v634_v30 = vsel %vm602_vm3, %v633_v8, %v1554_v5  ;;  %v697_v13 = vperm.slane %v1739_v16, 0 }
  0x8b   : > { %v664_v53 = vsub.f32 2.0, %v663_v59  ;;  %v698_v55 = vperm.slane %v1753_v48, 0  ;;  %v346_v6 = vsub.f32 0.0, %v345_v24  ;;  %v641_v7 = vsel %vm602_vm3, %v640_v26, %v289_v4 }
  0x8c   : > { %v377_v5 = vmul.f32 0.125, %v376_v57  ;;  %v635_v40 = vsel %vm604_vm4, %v634_v30, %v335_v35 }
  0x8d   : > { %v665_v62 = vmul.f32 %v1194_v10, %v664_v53  ;;  %v642_v49 = vsel %vm604_vm4, %v641_v7, %v346_v6 }
  0x8e   : > { %v636_v36 = vsel %vm606_vm5, %v635_v40, %v377_v5  ;;  %v643_v35 = vsel %vm606_vm5, %v642_v49, 0.0 }
  0x8f   : > { %v666_v41 = vmul.f32 %v665_v62, %v1714_v29  ;;  %v668_v1 = vmul.f32 %v667_v47, %v665_v62  ;;  %v637_v59 = vsel %vm608_vm6, %v636_v36, %v1633_v43  ;;  %v644_v37 = vsel %vm608_vm6, %v643_v35, %v1635_v2 }
  0x90   : > { %v687_v21 = vperm.slane %v637_v59, 0  ;;  %v688_v39 = vperm.slane %v644_v37, 0 }
  0x91   : > { %v669_v61 = vperm.slane %v666_v41, 0  ;;  %v670_v0 = vperm.slane %v668_v1, 0 }
  0x93   : > { %v671_v27 = vmul.f32 %v669_v61, %v1714_v29  ;;  %v672_v17 = vmul.f32 %v670_v0, %v1720_v15  ;;  %v674_v46 = vmul.f32 %v669_v61, %v1720_v15  ;;  %v675_v32 = vmul.f32 %v670_v0, %v1714_v29 }
  0x95   : > { %v1792_v44 = vsub.f32 %v671_v27, %v672_v17  ;;  %v1794_v50 = vadd.f32 %v675_v32, %v674_v46 }
  0x97   : > { %v679_v12 = vmul.f32 %v677_v51, %v1792_v44  ;;  %v680_v15 = vmul.f32 %v678_v11, %v1794_v50  ;;  %v683_v29 = vmul.f32 %v677_v51, %v1794_v50  ;;  %v684_v22 = vmul.f32 %v678_v11, %v1792_v44 }
  0x98   : > { %v699_v63 = vmul.f32 %v697_v13, %v1792_v44  ;;  %v700_v20 = vmul.f32 %v698_v55, %v1794_v50  ;;  %v703_v9 = vmul.f32 %v697_v13, %v1794_v50  ;;  %v704_v25 = vmul.f32 %v698_v55, %v1792_v44 }
  0x99   : > { %v681_v54 = vsub.f32 %v679_v12, %v680_v15  ;;  %v685_v38 = vadd.f32 %v684_v22, %v683_v29  ;;  %v689_v47 = vmul.f32 %v687_v21, %v1792_v44  ;;  %v690_v52 = vmul.f32 %v688_v39, %v1794_v50 }
  0x9a   : > { %v701_v42 = vsub.f32 %v699_v63, %v700_v20  ;;  %v705_v10 = vadd.f32 %v704_v25, %v703_v9  ;;  %v694_v56 = vmul.f32 %v688_v39, %v1792_v44  ;;  %v725_v8 = vperm.slane %v1792_v44, 1 }
  0x9b   : > { %v682_v33 = vsub.f32 %v623_v45, %v681_v54  ;;  %v686_v23 = vsub.f32 %v630_v58, %v685_v38  ;;  %v691_v45 = vsub.f32 %v689_v47, %v690_v52  ;;  %v726_v61 = vperm.slane %v1794_v50, 1 }
  0x9c   : > { %v702_v24 = vsub.f32 %v1739_v16, %v701_v42  ;;  %v706_v19 = vsub.f32 %v1753_v48, %v705_v10  ;;  %v693_v16 = vmul.f32 %v687_v21, %v1794_v50 }
  0x9d   : > { %v707_v18 = vmul.f32 %v682_v33, %v682_v33  ;;  %v708_v28 = vmul.f32 %v686_v23, %v686_v23  ;;  %v715_v62 = vsub.f32 0.0, %v686_v23  ;;  %v692_v60 = vsub.f32 %v637_v59, %v691_v45 }
  0x9e   : > { %v695_v43 = vadd.f32 %v694_v56, %v693_v16  ;;  %v745_v32 = vperm.slane %v702_v24, 1  ;;  %v746_v57 = vperm.slane %v706_v19, 1 }
  0x9f   : > { %v709_v14 = vadd.f32 %v708_v28, %v707_v18  ;;  %v735_v11 = vperm.slane %v692_v60, 1 }
  0xa0   : > { %v696_v41 = vsub.f32 %v644_v37, %v695_v43 }
  0xa1   : > { %1195 = vrcp.f32 %v709_v14 }
  0xa2   : > { %v736_v27 = vperm.slane %v696_v41, 1 }
  0xa7   : > { %v1196_v53 = vpop.eup %1195 }
  0xa8   : > { %v711_v48 = vmul.f32 %v1196_v53, %v709_v14 }
  0xaa   : > { %v712_v31 = vsub.f32 2.0, %v711_v48 }
  0xac   : > { %v713_v34 = vmul.f32 %v1196_v53, %v712_v31 }
  0xae   : > { %v714_v58 = vmul.f32 %v713_v34, %v682_v33  ;;  %v716_v2 = vmul.f32 %v715_v62, %v713_v34 }
  0xb0   : > { %v717_v1 = vperm.slane %v714_v58, 1  ;;  %v718_v3 = vperm.slane %v716_v2, 1 }
  0xb2   : > { %v719_v0 = vmul.f32 %v717_v1, %v682_v33  ;;  %v720_v4 = vmul.f32 %v718_v3, %v686_v23  ;;  %v722_v26 = vmul.f32 %v717_v1, %v686_v23  ;;  %v723_v51 = vmul.f32 %v718_v3, %v682_v33 }
  0xb4   : > { %v1823_v17 = vsub.f32 %v719_v0, %v720_v4  ;;  %v1825_v46 = vadd.f32 %v723_v51, %v722_v26 }
  0xb6   : > { %v727_v30 = vmul.f32 %v725_v8, %v1823_v17  ;;  %v728_v13 = vmul.f32 %v726_v61, %v1825_v46  ;;  %v731_v55 = vmul.f32 %v725_v8, %v1825_v46  ;;  %v732_v6 = vmul.f32 %v726_v61, %v1823_v17 }
  0xb7   : > { %v737_v7 = vmul.f32 %v735_v11, %v1823_v17  ;;  %v738_v12 = vmul.f32 %v736_v27, %v1825_v46  ;;  %v741_v15 = vmul.f32 %v735_v11, %v1825_v46  ;;  %v742_v29 = vmul.f32 %v736_v27, %v1823_v17 }
  0xb8   : > { %v729_v22 = vsub.f32 %v727_v30, %v728_v13  ;;  %v733_v5 = vadd.f32 %v732_v6, %v731_v55  ;;  %v747_v40 = vmul.f32 %v745_v32, %v1823_v17  ;;  %v748_v54 = vmul.f32 %v746_v57, %v1825_v46 }
  0xb9   : > { %v739_v38 = vsub.f32 %v737_v7, %v738_v12  ;;  %v743_v63 = vadd.f32 %v742_v29, %v741_v15  ;;  %v751_v20 = vmul.f32 %v745_v32, %v1825_v46  ;;  %v752_v49 = vmul.f32 %v746_v57, %v1823_v17 }
  0xba   : > { %v730_v9 = vsub.f32 %v1792_v44, %v729_v22  ;;  %v734_v25 = vsub.f32 %v1794_v50, %v733_v5  ;;  %v749_v33 = vsub.f32 %v747_v40, %v748_v54  ;;  %v783_v6 = vperm.slane %v1823_v17, 2 }
  0xbb   : > { %v740_v23 = vsub.f32 %v692_v60, %v739_v38  ;;  %v744_v42 = vsub.f32 %v696_v41, %v743_v63  ;;  %v753_v36 = vadd.f32 %v752_v49, %v751_v20  ;;  %v784_v7 = vperm.slane %v1825_v46, 2 }
  0xbc   : > { %v750_v10 = vsub.f32 %v702_v24, %v749_v33  ;;  %v773_v50 = vperm.slane %v730_v9, 2  ;;  %v774_v56 = vperm.slane %v734_v25, 2 }
  0xbd   : > { %v754_v35 = vsub.f32 %v706_v19, %v753_v36  ;;  %v755_v18 = vmul.f32 %v740_v23, %v740_v23  ;;  %v756_v28 = vmul.f32 %v744_v42, %v744_v42  ;;  %v763_v39 = vsub.f32 0.0, %v744_v42 }
  0xbe   : > { %v793_v43 = vperm.slane %v750_v10, 2 }
  0xbf   : > { %v757_v14 = vadd.f32 %v756_v28, %v755_v18  ;;  %v794_v34 = vperm.slane %v754_v35, 2 }
  0xc1   : > { %1197 = vrcp.f32 %v757_v14 }
  0xc7   : > { %v1198_v59 = vpop.eup %1197 }
  0xc8   : > { %v759_v37 = vmul.f32 %v1198_v59, %v757_v14 }
  0xca   : > { %v760_v21 = vsub.f32 2.0, %v759_v37 }
  0xcc   : > { %v761_v53 = vmul.f32 %v1198_v59, %v760_v21 }
  0xce   : > { %v762_v47 = vmul.f32 %v761_v53, %v740_v23  ;;  %v764_v52 = vmul.f32 %v763_v39, %v761_v53 }
  0xd0   : > { %v765_v44 = vperm.slane %v762_v47, 2  ;;  %v766_v16 = vperm.slane %v764_v52, 2 }
  0xd2   : > { %v767_v48 = vmul.f32 %v765_v44, %v740_v23  ;;  %v768_v31 = vmul.f32 %v766_v16, %v744_v42  ;;  %v770_v62 = vmul.f32 %v765_v44, %v744_v42  ;;  %v771_v24 = vmul.f32 %v766_v16, %v740_v23 }
  0xd4   : > { %v1841_v19 = vsub.f32 %v767_v48, %v768_v31  ;;  %v1843_v45 = vadd.f32 %v771_v24, %v770_v62 }
  0xd6   : > { %v775_v58 = vmul.f32 %v773_v50, %v1841_v19  ;;  %v776_v2 = vmul.f32 %v774_v56, %v1843_v45  ;;  %v779_v60 = vmul.f32 %v773_v50, %v1843_v45  ;;  %v780_v41 = vmul.f32 %v774_v56, %v1841_v19 }
  0xd7   : > { %v795_v8 = vmul.f32 %v793_v43, %v1841_v19  ;;  %v796_v61 = vmul.f32 %v794_v34, %v1843_v45  ;;  %v799_v0 = vmul.f32 %v793_v43, %v1843_v45  ;;  %v800_v4 = vmul.f32 %v794_v34, %v1841_v19 }
  0xd8   : > { %v777_v1 = vsub.f32 %v775_v58, %v776_v2  ;;  %v781_v3 = vadd.f32 %v780_v41, %v779_v60  ;;  %v785_v15 = vmul.f32 %v783_v6, %v1841_v19  ;;  %v786_v29 = vmul.f32 %v784_v7, %v1843_v45 }
  0xd9   : > { %v797_v11 = vsub.f32 %v795_v8, %v796_v61  ;;  %v801_v27 = vadd.f32 %v800_v4, %v799_v0  ;;  %v789_v22 = vmul.f32 %v783_v6, %v1843_v45  ;;  %v790_v5 = vmul.f32 %v784_v7, %v1841_v19 }
  0xda   : > { %v778_v26 = vsub.f32 %v730_v9, %v777_v1  ;;  %v782_v51 = vsub.f32 %v734_v25, %v781_v3  ;;  %v787_v63 = vsub.f32 %v785_v15, %v786_v29  ;;  %v841_v47 = vperm.slane %v1841_v19, 3 }
  0xdb   : > { %v798_v32 = vsub.f32 %v750_v10, %v797_v11  ;;  %v802_v57 = vsub.f32 %v754_v35, %v801_v27  ;;  %v791_v20 = vadd.f32 %v790_v5, %v789_v22 }
  0xdc   : > { %v788_v33 = vsub.f32 %v1823_v17, %v787_v63  ;;  %v821_v10 = vperm.slane %v778_v26, 3  ;;  %v822_v35 = vperm.slane %v782_v51, 3  ;;  %v842_v17 = vperm.slane %v1843_v45, 3 }
  0xdd   : > { %v803_v30 = vmul.f32 %v798_v32, %v798_v32  ;;  %v804_v13 = vmul.f32 %v802_v57, %v802_v57  ;;  %v811_v38 = vsub.f32 0.0, %v802_v57  ;;  %v792_v23 = vsub.f32 %v1825_v46, %v791_v20 }
  0xde   : > { %v831_v37 = vperm.slane %v788_v33, 3 }
  0xdf   : > { %v805_v55 = vadd.f32 %v804_v13, %v803_v30  ;;  %v832_v21 = vperm.slane %v792_v23, 3 }
  0xe1   : > { %1199 = vrcp.f32 %v805_v55 }
  0xe7   : > { %v1200_v12 = vpop.eup %1199 }
  0xe8   : > { %v807_v40 = vmul.f32 %v1200_v12, %v805_v55 }
  0xea   : > { %v808_v54 = vsub.f32 2.0, %v807_v40 }
  0xec   : > { %v809_v49 = vmul.f32 %v1200_v12, %v808_v54 }
  0xee   : > { %v810_v9 = vmul.f32 %v809_v49, %v798_v32  ;;  %v812_v25 = vmul.f32 %v811_v38, %v809_v49 }
  0xf0   : > { %v813_v42 = vperm.slane %v810_v9, 3  ;;  %v814_v36 = vperm.slane %v812_v25, 3 }
  0xf2   : > { %v815_v18 = vmul.f32 %v813_v42, %v798_v32  ;;  %v816_v28 = vmul.f32 %v814_v36, %v802_v57  ;;  %v818_v14 = vmul.f32 %v813_v42, %v802_v57  ;;  %v819_v59 = vmul.f32 %v814_v36, %v798_v32 }
  0xf4   : > { %v1861_v39 = vsub.f32 %v815_v18, %v816_v28  ;;  %v1863_v53 = vadd.f32 %v819_v59, %v818_v14 }
  0xf6   : > { %v823_v46 = vmul.f32 %v821_v10, %v1861_v39  ;;  %v824_v52 = vmul.f32 %v822_v35, %v1863_v53  ;;  %v827_v44 = vmul.f32 %v821_v10, %v1863_v53  ;;  %v828_v16 = vmul.f32 %v822_v35, %v1861_v39 }
  0xf7   : > { %v833_v50 = vmul.f32 %v831_v37, %v1861_v39  ;;  %v834_v56 = vmul.f32 %v832_v21, %v1863_v53  ;;  %v837_v48 = vmul.f32 %v831_v37, %v1863_v53  ;;  %v838_v31 = vmul.f32 %v832_v21, %v1861_v39 }
  0xf8   : > { %v825_v62 = vsub.f32 %v823_v46, %v824_v52  ;;  %v829_v24 = vadd.f32 %v828_v16, %v827_v44  ;;  %v843_v43 = vmul.f32 %v841_v47, %v1861_v39  ;;  %v844_v34 = vmul.f32 %v842_v17, %v1863_v53 }
  0xf9   : > { %v835_v58 = vsub.f32 %v833_v50, %v834_v56  ;;  %v839_v2 = vadd.f32 %v838_v31, %v837_v48  ;;  %v847_v60 = vmul.f32 %v841_v47, %v1863_v53  ;;  %v848_v41 = vmul.f32 %v842_v17, %v1861_v39 }
  0xfa   : > { %v826_v1 = vsub.f32 %v778_v26, %v825_v62  ;;  %v830_v3 = vsub.f32 %v782_v51, %v829_v24  ;;  %v845_v8 = vsub.f32 %v843_v43, %v844_v34  ;;  %v868_v13 = vrot.slane %v1861_v39, 3 }
  0xfb   : > { %v836_v61 = vsub.f32 %v788_v33, %v835_v58  ;;  %v840_v0 = vsub.f32 %v792_v23, %v839_v2  ;;  %v849_v4 = vadd.f32 %v848_v41, %v847_v60  ;;  %v872_v12 = vrot.slane %v1863_v53, 3  ;;  %v1203_v58 = vld [vmem:[%s1472_s7] sm:$0xff] }
  0xfc   : > { %v846_v11 = vsub.f32 %v1841_v19, %v845_v8  ;;  %v1111_v9 = vadd.f32 -0.70710677, %v826_v1  ;;  %v1112_v25 = vadd.f32 -0.70710677, %v830_v3  ;;  %v1204_v60 = vld [vmem:[%s1472_s7 + $0x20] sm:$0xff]  ;;  %v1205_v8 = vld [vmem:[%s1472_s7 + $0x8] sm:$0xff] }
  0xfd   : > { %v850_v27 = vsub.f32 %v1843_v45, %v849_v4  ;;  %v852_v32 = vrot.slane %v836_v61, 1  ;;  %v856_v57 = vrot.slane %v840_v0, 1 }
  0xfe   : > { %v860_v30 = vrot.slane %v846_v11, 2 }
  0xff   : > { %v854_v55 = vadd.f32 %v852_v32, %v826_v1  ;;  %v858_v6 = vadd.f32 %v856_v57, %v830_v3  ;;  %v864_v7 = vrot.slane %v850_v27, 2 }
 0x101   : > { %v862_v26 = vadd.f32 %v860_v30, %v854_v55  ;;  %v866_v51 = vadd.f32 %v864_v7, %v858_v6 }
 0x103   : > { %v870_v15 = vadd.f32 %v868_v13, %v862_v26  ;;  %v874_v29 = vadd.f32 %v872_v12, %v866_v51  ;;  %v1207_v26 = vld [vmem:[%s1472_s7 + $0x10] sm:$0xff] }
 0x105   : > { %v1109_v22 = vadd.f32 -2.828427, %v870_v15  ;;  %v1110_v5 = vadd.f32 -2.828427, %v874_v29  ;;  %v1208_v15 = vld [vmem:[%s1472_s7 + $0x30] sm:$0xff] }
 0x107   : > { %v877_v40 = vmul.f32 %v1109_v22, %v1109_v22  ;;  %v878_v19 = vmul.f32 %v1110_v5, %v1110_v5  ;;  %v885_v20 = vsub.f32 0.0, %v1110_v5 }
 0x109   : > { %v879_v54 = vadd.f32 %v878_v19, %v877_v40 }
 0x10b   : > { %1201 = vrcp.f32 %v879_v54 }
 0x111   : > { %v1202_v45 = vpop.eup %1201 }
 0x112   : > { %v881_v38 = vmul.f32 %v1202_v45, %v879_v54 }
 0x114   : > { %v882_v63 = vsub.f32 2.0, %v881_v38 }
 0x116   : > { %v883_v49 = vmul.f32 %v1202_v45, %v882_v63 }
 0x118   : > { %v884_v33 = vmul.f32 %v1109_v22, %v883_v49  ;;  %v886_v23 = vmul.f32 %v885_v20, %v883_v49 }
 0x11a   : > { %v889_v42 = vmul.f32 %v1111_v9, %v884_v33  ;;  %v890_v36 = vmul.f32 %v1112_v25, %v886_v23  ;;  %v892_v10 = vmul.f32 %v1112_v25, %v884_v33  ;;  %v893_v35 = vmul.f32 %v1111_v9, %v886_v23  ;;  %v1209_v25 = vld [vmem:[%s1472_s7 + $0x18] sm:$0xff] }
 0x11b   : > { %v903_v18 = vmul.f32 %v884_v33, %v836_v61  ;;  %v904_v28 = vmul.f32 %v886_v23, %v840_v0  ;;  %v906_v14 = vmul.f32 %v884_v33, %v840_v0  ;;  %v907_v59 = vmul.f32 %v886_v23, %v836_v61  ;;  %v1206_v0 = vld [vmem:[%s1472_s7 + $0x28] sm:$0xff] }
 0x11c   : > { %v891_v37 = vsub.f32 %v889_v42, %v890_v36  ;;  %v894_v21 = vadd.f32 %v893_v35, %v892_v10  ;;  %v919_v47 = vmul.f32 %v884_v33, %v846_v11  ;;  %v920_v17 = vmul.f32 %v886_v23, %v850_v27  ;;  %v1210_v42 = vld [vmem:[%s1472_s7 + $0x38] sm:$0xff] }
 0x11d   : > { %v905_v46 = vsub.f32 %v903_v18, %v904_v28  ;;  %v908_v52 = vadd.f32 %v907_v59, %v906_v14  ;;  %v922_v44 = vmul.f32 %v884_v33, %v850_v27  ;;  %v923_v16 = vmul.f32 %v886_v23, %v846_v11 }
 0x11e   : > { %v895_v50 = vperm.slane %v891_v37, 4  ;;  %v896_v56 = vperm.slane %v894_v21, 4  ;;  %v921_v48 = vsub.f32 %v919_v47, %v920_v17  ;;  %v935_v31 = vmul.f32 %v884_v33, %v1861_v39 }
 0x11f   : > { %v909_v62 = vperm.slane %v905_v46, 4  ;;  %v910_v24 = vperm.slane %v908_v52, 4  ;;  %v924_v43 = vadd.f32 %v923_v16, %v922_v44  ;;  %v936_v34 = vmul.f32 %v886_v23, %v1863_v53 }
 0x120   : > { %v897_v2 = vmul.f32 %v1203_v58, %v895_v50  ;;  %v898_v41 = vmul.f32 %v1204_v60, %v896_v56  ;;  %v900_v1 = vmul.f32 %v1204_v60, %v895_v50  ;;  %v901_v3 = vmul.f32 %v1203_v58, %v896_v56 }
 0x121   : > { %v911_v61 = vmul.f32 %v1205_v8, %v909_v62  ;;  %v912_v4 = vmul.f32 %v1206_v0, %v910_v24  ;;  %v914_v11 = vmul.f32 %v1206_v0, %v909_v62  ;;  %v915_v27 = vmul.f32 %v1205_v8, %v910_v24 }
 0x122   : > { %v899_v32 = vadd.f32 %v898_v41, %v897_v2  ;;  %v902_v57 = vsub.f32 %v900_v1, %v901_v3  ;;  %v925_v30 = vperm.slane %v921_v48, 4  ;;  %v926_v13 = vperm.slane %v924_v43, 4 }
 0x123   : > { %v913_v55 = vadd.f32 %v912_v4, %v911_v61  ;;  %v916_v6 = vsub.f32 %v914_v11, %v915_v27  ;;  %v937_v7 = vsub.f32 %v935_v31, %v936_v34  ;;  %v938_v12 = vmul.f32 %v884_v33, %v1863_v53 }
 0x124   : > { %v927_v51 = vmul.f32 %v1207_v26, %v925_v30  ;;  %v928_v29 = vmul.f32 %v1208_v15, %v926_v13  ;;  %v930_v22 = vmul.f32 %v1208_v15, %v925_v30  ;;  %v931_v5 = vmul.f32 %v1207_v26, %v926_v13 }
 0x125   : > { %v917_v40 = vadd.f32 %v913_v55, %v899_v32  ;;  %v918_v19 = vadd.f32 %v916_v6, %v902_v57  ;;  %v939_v54 = vmul.f32 %v886_v23, %v1861_v39  ;;  %v941_v45 = vperm.slane %v937_v7, 4 }
 0x126   : > { %v929_v38 = vadd.f32 %v928_v29, %v927_v51  ;;  %v932_v63 = vsub.f32 %v930_v22, %v931_v5 }
 0x127   : > { %v940_v20 = vadd.f32 %v939_v54, %v938_v12  ;;  %v943_v33 = vmul.f32 %v1209_v25, %v941_v45  ;;  %v946_v36 = vmul.f32 %v1210_v42, %v941_v45 }
 0x128   : > { %v933_v49 = vadd.f32 %v929_v38, %v917_v40  ;;  %v934_v53 = vadd.f32 %v932_v63, %v918_v19 }
 0x129   : > { %v942_v9 = vperm.slane %v940_v20, 4 }
 0x12b   : > { %v944_v10 = vmul.f32 %v1210_v42, %v942_v9  ;;  %v947_v39 = vmul.f32 %v1209_v25, %v942_v9 }
 0x12d   : > { %v945_v23 = vadd.f32 %v944_v10, %v943_v33  ;;  %v948_v35 = vsub.f32 %v946_v36, %v947_v39 }
 0x12f   : > { %v949_v18 = vadd.f32 %v945_v23, %v933_v49  ;;  %v950_v28 = vadd.f32 %v948_v35, %v934_v53 }
 0x131   : > { %951 = vst [vmem:[%s225_s16] sm:$0xff] %v949_v18 }
 0x132   : > { %1113 = vst [vmem:[%s225_s16 + $0x8] sm:$0xff] %v950_v28 }
 0x133   : > { %1298 = shalt.err (!%p1295_p13)
}
 0x134   : > { %s1361_s3 = smov 128   ;;  %s1362_s25 = smov 8  }
 0x135   : > { %1126 = dma.vmem_to_hbm [thread:$0]  (%p1429_p9), %s969_s18, 256, %s971_s20, %s955_s12, %s1361_s3, %s1361_s3, %s1362_s25  }
 0x136 PF: > { %s985_s26 = sand.u32 1, %s1337_s9   ;;  %p1136_p0 = pnand %p1084_p12, %p1436_p11 }
 0x137   : > { %s986_s21 = scalar_lea.sflag [#allocation4], %s985_s26 }
 0x138   : > { %p1137_p1 = pneg %p1136_p0 }
 0x13a   : > { %1332 = dma.done.wait (%p1137_p1), %s986_s21, 256  }
 0x13b   : > { %1334 = vsyncadd (%p1137_p1), %s986_s21, 4294967040  ;;  %s21_s14 = sadd.s32 1, %s1357_s14   ;;  %s1942_s9 = smov %s1341_s10 }
 0x13c   : > { %p18_p2 = scmp.ge.s32.totalorder %s21_s14, 4   ;;  %s1943_s10 = smov %s1345_s11 }
 0x13d   : > { %s1944_s11 = smov %s1434_s23  ;;  %s1945_s12 = smov %s1353_s13 }
 0x13e   : > { %s1946_s13 = smov %s1948_s17  ;;  %20 = sbr.rel (!%p18_p2) target bundleno = 8 (0x8), region = 101 }
 0x143   :  { %992 = vsyncpa [#allocation3], 1 }
 0x144   :  { %994 = vsyncpa [#allocation3 + $0x1], 1 }
 0x145   :  { %995 = vsyncpa [#allocation6], 1 }
 0x146   :  { %997 = vsyncpa [#allocation6 + $0x1], 1 }
 0x147   :  { %998 = vsyncpa [#allocation4], 1 }
 0x148   :  { %1000 = vsyncpa [#allocation4 + $0x1], 1 }

</bundles_post_ra>
